<compile_context>
chip_gen: v7x
topology: tpu7x:2x2x1
jax: 0.10.0
libtpu: 0.0.40
codegen_flags: <defaults>
</compile_context>

<pallas_src>
import jax
import jax.numpy as jnp
from jax import lax
from jax.experimental import pallas as pl
from jax.experimental.pallas import tpu as pltpu


_VMEM = pl.BlockSpec(memory_space=pltpu.MemorySpace.VMEM)
_SMEM = pl.BlockSpec(memory_space=pltpu.MemorySpace.SMEM)
# Known-good cap on v5e/v6e/v7x at these shapes; raise on 128 MiB parts once
# T-chunk tiling for long sequences is added.
_COMPILER_PARAMS = pltpu.CompilerParams(vmem_limit_bytes=32 * 1024 * 1024)


# ----------------- fused gather + bidirectional LSTM kernel -----------------

def _make_fused_bilstm_kernel(T, B, H):
    """Packed gate layout (8H columns): [ fwd: i f o g | bwd: i f o g ]."""
    G = 4 * H

    def kernel(tok_ref, table_ref, whh_ref, out_ref):
        # Hoist recurrent weights out of the loop; block-diagonal (2H, 8H) RHS
        # stays staged in the MXU across all timesteps.
        whh_bd = whh_ref[...]

        def gather_x(t):
            # Folded input-projection rows (embed @ W_ih + biases) for every
            # batch element at time t; token ids come from SMEM, table rows are
            # gathered with dynamic leading-axis loads from the VMEM table.
            rows = [table_ref[tok_ref[t, b]] for b in range(B)]      # each (1, 8H)
            return rows[0] if B == 1 else jnp.concatenate(rows, axis=0)  # (B, 8H)

        def half_cell(gates, c):
            # gates: (B, 4H), columns ordered (i, f, o, g)
            s = jax.nn.sigmoid(gates[:, 0:3 * H])        # one contiguous EUP push: i|f|o
            g = jnp.tanh(gates[:, 3 * H:4 * H])
            c_new = s[:, H:2 * H] * c + s[:, 0:H] * g
            h_new = s[:, 2 * H:3 * H] * jnp.tanh(c_new)
            return h_new, c_new

        def body(step, carry):
            h_pk, c_f, c_b = carry
            t_b = T - 1 - step
            # One merged dot covers both (independent) directions.
            rec = jnp.dot(h_pk, whh_bd, preferred_element_type=jnp.float32)  # (B, 8H)
            x_f = gather_x(step)      # forward consumes time `step`
            x_b = gather_x(t_b)       # backward consumes time `T-1-step`
            h_f, c_f = half_cell(rec[:, 0:G] + x_f[:, 0:G], c_f)
            h_b, c_b = half_cell(rec[:, G:2 * G] + x_b[:, G:2 * G], c_b)
            # TODO(synk): for real shapes make this writeback lane-dense
            # ((T, B*2H) layout or 2H >= 128) to avoid masked partial stores.
            out_ref[step, :, 0:H] = h_f
            out_ref[t_b, :, H:2 * H] = h_b
            return jnp.concatenate([h_f, h_b], axis=1), c_f, c_b

        h0 = jnp.zeros((B, 2 * H), jnp.float32)
        c0 = jnp.zeros((B, H), jnp.float32)
        unroll = True if T <= 32 else 8
        lax.fori_loop(0, T, body, (h0, c0, c0), unroll=unroll)

    return kernel


def aug_encoder_forward(tokens, params):
    """tokens: [T, B] int32 -> [T, B, 2H] float32."""
    T, B = tokens.shape
    H = params["n_hidden"]
    V, G8 = params["table_proj"].shape
    table3 = params["table_proj"].reshape(V, 1, G8)   # (V, 1, 8H) for leading-axis gather

    # embed_dropout: identity (module default dropout=0 / eval mode); the
    # embedding+projection fold is only valid under identity dropout.
    # TODO(synk): training-mode dropout p>0 needs pltpu.prng_random_bits applied
    # to the embedding *before* the projection (un-fold the table in that case).
    # TODO(synk): long sequences -> chunk T with an 'arbitrary' grid axis, carry
    # (h, c) in VMEM scratch, reversed index_map for the backward chunks; on v7x
    # split the two directions across the 2 TensorCores.
    # TODO(synk): large vocab -> keep table_proj in HBM (pl.ANY) and DMA-gather
    # rows with scalar-prefetched token ids instead of a VMEM-resident table.
    return pl.pallas_call(
        _make_fused_bilstm_kernel(T, B, H),
        out_shape=jax.ShapeDtypeStruct((T, B, 2 * H), jnp.float32),
        in_specs=[_SMEM, _VMEM, _VMEM],
        out_specs=_VMEM,
        compiler_params=_COMPILER_PARAMS,
    )(tokens, table3, params["whh_bd"])


# --------------------- deterministic parameter init ---------------------

def init_params(key, vocab_size, pad_idx, n_embed, n_hidden):
    keys = jax.random.split(key, 9)
    k = 1.0 / jnp.sqrt(n_hidden)
    H = n_hidden

    embed = jax.random.normal(keys[0], (vocab_size, n_embed), jnp.float32)
    embed = embed.at[pad_idx].set(0.0)  # padding_idx row zeroed (as nn.Embedding)

    def u(kk, shape):
        return jax.random.uniform(kk, shape, jnp.float32, -k, k)

    # PyTorch layout: weight_ih [4H, E], weight_hh [4H, H], biases [4H]; rows (i,f,g,o)
    wih_f = u(keys[1], (4 * H, n_embed))
    whh_f = u(keys[2], (4 * H, H))
    b_f = u(keys[3], (4 * H,)) + u(keys[4], (4 * H,))
    wih_b = u(keys[5], (4 * H, n_embed))
    whh_b = u(keys[6], (4 * H, H))
    b_b = u(keys[7], (4 * H,)) + u(keys[8], (4 * H,))

    def reorder_ifog(w_t):  # (X, 4H) columns (i,f,g,o) -> (i,f,o,g)
        return jnp.concatenate(
            [w_t[:, 0:H], w_t[:, H:2 * H], w_t[:, 3 * H:4 * H], w_t[:, 2 * H:3 * H]],
            axis=1)

    wih_f_r, wih_b_r = reorder_ifog(wih_f.T), reorder_ifog(wih_b.T)   # (E, 4H)
    whh_f_r, whh_b_r = reorder_ifog(whh_f.T), reorder_ifog(whh_b.T)   # (H, 4H)
    b_f_r = reorder_ifog(b_f.reshape(1, -1))
    b_b_r = reorder_ifog(b_b.reshape(1, -1))

    # Offline fold: embedding -> packed input-projection table [V, 8H] = [fwd 4H | bwd 4H]
    wih_packed = jnp.concatenate([wih_f_r, wih_b_r], axis=1)          # (E, 8H)
    bias_packed = jnp.concatenate([b_f_r, b_b_r], axis=1)             # (1, 8H)
    table_proj = embed @ wih_packed + bias_packed                     # (V, 8H)

    # Block-diagonal recurrent weights (2H, 8H): rows 0:H -> fwd cols, H:2H -> bwd cols
    zeros_h4 = jnp.zeros((H, 4 * H), jnp.float32)
    whh_bd = jnp.concatenate(
        [jnp.concatenate([whh_f_r, zeros_h4], axis=1),
         jnp.concatenate([zeros_h4, whh_b_r], axis=1)], axis=0)

    params = {
        "n_hidden": n_hidden,
        "table_proj": table_proj,
        "whh_bd": whh_bd,
        # unpacked copies (PyTorch i,f,g,o order) for the pure-JAX reference
        "wih_f": wih_f.T, "wih_b": wih_b.T,       # [E, 4H]
        "whh_f": whh_f.T, "whh_b": whh_b.T,       # [H, 4H]
        "b_f": b_f.reshape(1, -1), "b_b": b_b.reshape(1, -1),
    }
    return embed, params


# --------------------- pure-JAX reference (for checking) ---------------------

def reference_forward(tokens, embed_table, params):
    emb = jnp.take(embed_table, tokens, axis=0).astype(jnp.float32)
    H = params["whh_f"].shape[0]

    def make_step(wih, whh, b):
        def step(carry, x):
            h, c = carry
            gates = x @ wih + h @ whh + b
            i = jax.nn.sigmoid(gates[:, 0:H])
            f = jax.nn.sigmoid(gates[:, H:2 * H])
            g = jnp.tanh(gates[:, 2 * H:3 * H])
            o = jax.nn.sigmoid(gates[:, 3 * H:4 * H])
            c_new = f * c + i * g
            h_new = o * jnp.tanh(c_new)
            return (h_new, c_new), h_new
        return step

    B = emb.shape[1]
    z = jnp.zeros((B, H), jnp.float32)
    _, out_f = lax.scan(make_step(params["wih_f"], params["whh_f"], params["b_f"]),
                        (z, z), emb)
    _, out_b_rev = lax.scan(make_step(params["wih_b"], params["whh_b"], params["b_b"]),
                            (z, z), emb[::-1])
    out_b = out_b_rev[::-1]
    return jnp.concatenate([out_f, out_b], axis=-1)


if __name__ == "__main__":
    VOCAB, PAD = 50, 0
    N_EMBED, N_HIDDEN = 32, 32
    T, B = 8, 2

    key = jax.random.PRNGKey(0)
    k_tok, k_par = jax.random.split(key)
    tokens = jax.random.randint(k_tok, (T, B), 1, VOCAB, dtype=jnp.int32)
    tokens = tokens.at[-1, 0].set(PAD)  # include a pad token

    embed_table, params = init_params(k_par, VOCAB, PAD, N_EMBED, N_HIDDEN)

    out = jax.block_until_ready(aug_encoder_forward(tokens, params))
    assert out.shape == (T, B, 2 * N_HIDDEN), out.shape

    ref = jax.block_until_ready(reference_forward(tokens, embed_table, params))
    assert jnp.allclose(out, ref, atol=1e-4, rtol=1e-4), "mismatch vs reference"

    print("KERNEL_OK")
</pallas_src>

<mosaic_0001>
module attributes {stable_mosaic.version = 11 : i64} {
  func.func @kernel(%arg0: memref<8x2xi32, #tpu.memory_space<smem>>, %arg1: memref<50x1x256xf32, #tpu.memory_space<vmem>>, %arg2: memref<64x256xf32, #tpu.memory_space<vmem>>, %arg3: memref<8x2x64xf32, #tpu.memory_space<vmem>>) attributes {dimension_semantics = [], scalar_prefetch = 0 : i64, scratch_operands = 0 : i64, tpu.core_type = #tpu.core_type<tc>} {
    %c0 = arith.constant 0 : index
    %c0_0 = arith.constant 0 : index
    %0 = vector.load %arg2[%c0, %c0_0] : memref<64x256xf32, #tpu.memory_space<vmem>>, vector<64x256xf32>
    %cst = arith.constant 0.000000e+00 : f32
    %1 = vector.broadcast %cst : f32 to vector<2x64xf32>
    %cst_1 = arith.constant 0.000000e+00 : f32
    %2 = vector.broadcast %cst_1 : f32 to vector<2x32xf32>
    %c0_i32 = arith.constant 0 : i32
    %c7_i32 = arith.constant 7 : i32
    %3 = arith.subi %c7_i32, %c0_i32 : i32
    %cst_2 = arith.constant dense<0.000000e+00> : vector<2x256xf32>
    %4 = tpu.matmul %1, %0, %cst_2 {dimension_numbers = #tpu.dot_dimension_numbers<[1], [0], [0], [1], [0, 0, 1, 1], [], []>} : vector<2x64xf32>, vector<64x256xf32>, vector<2x256xf32> -> vector<2x256xf32>
    %5 = arith.index_cast %c0_i32 : i32 to index
    %c0_3 = arith.constant 0 : index
    %6 = memref.load %arg0[%5, %c0_3] : memref<8x2xi32, #tpu.memory_space<smem>>
    %7 = arith.index_cast %6 : i32 to index
    %c0_4 = arith.constant 0 : index
    %c0_5 = arith.constant 0 : index
    %8 = vector.load %arg1[%7, %c0_4, %c0_5] : memref<50x1x256xf32, #tpu.memory_space<vmem>>, vector<1x1x256xf32>
    %9 = vector.shape_cast %8 : vector<1x1x256xf32> to vector<1x256xf32>
    %10 = arith.index_cast %c0_i32 : i32 to index
    %c1 = arith.constant 1 : index
    %11 = memref.load %arg0[%10, %c1] : memref<8x2xi32, #tpu.memory_space<smem>>
    %12 = arith.index_cast %11 : i32 to index
    %c0_6 = arith.constant 0 : index
    %c0_7 = arith.constant 0 : index
    %13 = vector.load %arg1[%12, %c0_6, %c0_7] : memref<50x1x256xf32, #tpu.memory_space<vmem>>, vector<1x1x256xf32>
    %14 = vector.shape_cast %13 : vector<1x1x256xf32> to vector<1x256xf32>
    %15 = tpu.concatenate %9, %14 in 0 : vector<1x256xf32>, vector<1x256xf32> -> vector<2x256xf32>
    %16 = arith.index_cast %3 : i32 to index
    %c0_8 = arith.constant 0 : index
    %17 = memref.load %arg0[%16, %c0_8] : memref<8x2xi32, #tpu.memory_space<smem>>
    %18 = arith.index_cast %17 : i32 to index
    %c0_9 = arith.constant 0 : index
    %c0_10 = arith.constant 0 : index
    %19 = vector.load %arg1[%18, %c0_9, %c0_10] : memref<50x1x256xf32, #tpu.memory_space<vmem>>, vector<1x1x256xf32>
    %20 = vector.shape_cast %19 : vector<1x1x256xf32> to vector<1x256xf32>
    %21 = arith.index_cast %3 : i32 to index
    %c1_11 = arith.constant 1 : index
    %22 = memref.load %arg0[%21, %c1_11] : memref<8x2xi32, #tpu.memory_space<smem>>
    %23 = arith.index_cast %22 : i32 to index
    %c0_12 = arith.constant 0 : index
    %c0_13 = arith.constant 0 : index
    %24 = vector.load %arg1[%23, %c0_12, %c0_13] : memref<50x1x256xf32, #tpu.memory_space<vmem>>, vector<1x1x256xf32>
    %25 = vector.shape_cast %24 : vector<1x1x256xf32> to vector<1x256xf32>
    %26 = tpu.concatenate %20, %25 in 0 : vector<1x256xf32>, vector<1x256xf32> -> vector<2x256xf32>
    %27 = vector.extract_strided_slice %4 {offsets = [0, 0], sizes = [2, 128], strides = [1, 1]} : vector<2x256xf32> to vector<2x128xf32>
    %28 = vector.extract_strided_slice %15 {offsets = [0, 0], sizes = [2, 128], strides = [1, 1]} : vector<2x256xf32> to vector<2x128xf32>
    %29 = arith.addf %27, %28 : vector<2x128xf32>
    %30 = vector.extract_strided_slice %29 {offsets = [0, 0], sizes = [2, 96], strides = [1, 1]} : vector<2x128xf32> to vector<2x96xf32>
    %31 = arith.negf %30 : vector<2x96xf32>
    %32 = math.exp %31 : vector<2x96xf32>
    %cst_14 = arith.constant 1.000000e+00 : f32
    %33 = vector.broadcast %cst_14 : f32 to vector<2x96xf32>
    %34 = arith.addf %33, %32 : vector<2x96xf32>
    %35 = arith.divf %33, %34 : vector<2x96xf32>
    %36 = vector.extract_strided_slice %29 {offsets = [0, 96], sizes = [2, 32], strides = [1, 1]} : vector<2x128xf32> to vector<2x32xf32>
    %37 = math.tanh %36 : vector<2x32xf32>
    %38 = vector.extract_strided_slice %35 {offsets = [0, 32], sizes = [2, 32], strides = [1, 1]} : vector<2x96xf32> to vector<2x32xf32>
    %39 = arith.mulf %38, %2 : vector<2x32xf32>
    %40 = vector.extract_strided_slice %35 {offsets = [0, 0], sizes = [2, 32], strides = [1, 1]} : vector<2x96xf32> to vector<2x32xf32>
    %41 = arith.mulf %40, %37 : vector<2x32xf32>
    %42 = arith.addf %39, %41 : vector<2x32xf32>
    %43 = vector.extract_strided_slice %35 {offsets = [0, 64], sizes = [2, 32], strides = [1, 1]} : vector<2x96xf32> to vector<2x32xf32>
    %44 = math.tanh %42 : vector<2x32xf32>
    %45 = arith.mulf %43, %44 : vector<2x32xf32>
    %46 = vector.extract_strided_slice %4 {offsets = [0, 128], sizes = [2, 128], strides = [1, 1]} : vector<2x256xf32> to vector<2x128xf32>
    %47 = vector.extract_strided_slice %26 {offsets = [0, 128], sizes = [2, 128], strides = [1, 1]} : vector<2x256xf32> to vector<2x128xf32>
    %48 = arith.addf %46, %47 : vector<2x128xf32>
    %49 = vector.extract_strided_slice %48 {offsets = [0, 0], sizes = [2, 96], strides = [1, 1]} : vector<2x128xf32> to vector<2x96xf32>
    %50 = arith.negf %49 : vector<2x96xf32>
    %51 = math.exp %50 : vector<2x96xf32>
    %cst_15 = arith.constant 1.000000e+00 : f32
    %52 = vector.broadcast %cst_15 : f32 to vector<2x96xf32>
    %53 = arith.addf %52, %51 : vector<2x96xf32>
    %54 = arith.divf %52, %53 : vector<2x96xf32>
    %55 = vector.extract_strided_slice %48 {offsets = [0, 96], sizes = [2, 32], strides = [1, 1]} : vector<2x128xf32> to vector<2x32xf32>
    %56 = math.tanh %55 : vector<2x32xf32>
    %57 = vector.extract_strided_slice %54 {offsets = [0, 32], sizes = [2, 32], strides = [1, 1]} : vector<2x96xf32> to vector<2x32xf32>
    %58 = arith.mulf %57, %2 : vector<2x32xf32>
    %59 = vector.extract_strided_slice %54 {offsets = [0, 0], sizes = [2, 32], strides = [1, 1]} : vector<2x96xf32> to vector<2x32xf32>
    %60 = arith.mulf %59, %56 : vector<2x32xf32>
    %61 = arith.addf %58, %60 : vector<2x32xf32>
    %62 = vector.extract_strided_slice %54 {offsets = [0, 64], sizes = [2, 32], strides = [1, 1]} : vector<2x96xf32> to vector<2x32xf32>
    %63 = math.tanh %61 : vector<2x32xf32>
    %64 = arith.mulf %62, %63 : vector<2x32xf32>
    %65 = arith.index_cast %c0_i32 : i32 to index
    %c0_16 = arith.constant 0 : index
    %c0_17 = arith.constant 0 : index
    %66 = vector.load %arg3[%65, %c0_16, %c0_17] : memref<8x2x64xf32, #tpu.memory_space<vmem>>, vector<1x2x32xf32>
    %67 = vector.shape_cast %66 : vector<1x2x32xf32> to vector<2x32xf32>
    %68 = vector.shape_cast %45 : vector<2x32xf32> to vector<1x2x32xf32>
    tpu.vector_store %arg3[%65, %c0_16, %c0_17], %68 {strides = array<i32>} : memref<8x2x64xf32, #tpu.memory_space<vmem>>, vector<1x2x32xf32>,
    %69 = arith.index_cast %3 : i32 to index
    %c0_18 = arith.constant 0 : index
    %c32 = arith.constant 32 : index
    %70 = vector.load %arg3[%69, %c0_18, %c32] : memref<8x2x64xf32, #tpu.memory_space<vmem>>, vector<1x2x32xf32>
    %71 = vector.shape_cast %70 : vector<1x2x32xf32> to vector<2x32xf32>
    %72 = vector.shape_cast %64 : vector<2x32xf32> to vector<1x2x32xf32>
    tpu.vector_store %arg3[%69, %c0_18, %c32], %72 {strides = array<i32>} : memref<8x2x64xf32, #tpu.memory_space<vmem>>, vector<1x2x32xf32>,
    %73 = tpu.concatenate %45, %64 in 1 : vector<2x32xf32>, vector<2x32xf32> -> vector<2x64xf32>
    %c1_i32 = arith.constant 1 : i32
    %c7_i32_19 = arith.constant 7 : i32
    %74 = arith.subi %c7_i32_19, %c1_i32 : i32
    %cst_20 = arith.constant dense<0.000000e+00> : vector<2x256xf32>
    %75 = tpu.matmul %73, %0, %cst_20 {dimension_numbers = #tpu.dot_dimension_numbers<[1], [0], [0], [1], [0, 0, 1, 1], [], []>} : vector<2x64xf32>, vector<64x256xf32>, vector<2x256xf32> -> vector<2x256xf32>
    %76 = arith.index_cast %c1_i32 : i32 to index
    %c0_21 = arith.constant 0 : index
    %77 = memref.load %arg0[%76, %c0_21] : memref<8x2xi32, #tpu.memory_space<smem>>
    %78 = arith.index_cast %77 : i32 to index
    %c0_22 = arith.constant 0 : index
    %c0_23 = arith.constant 0 : index
    %79 = vector.load %arg1[%78, %c0_22, %c0_23] : memref<50x1x256xf32, #tpu.memory_space<vmem>>, vector<1x1x256xf32>
    %80 = vector.shape_cast %79 : vector<1x1x256xf32> to vector<1x256xf32>
    %81 = arith.index_cast %c1_i32 : i32 to index
    %c1_24 = arith.constant 1 : index
    %82 = memref.load %arg0[%81, %c1_24] : memref<8x2xi32, #tpu.memory_space<smem>>
    %83 = arith.index_cast %82 : i32 to index
    %c0_25 = arith.constant 0 : index
    %c0_26 = arith.constant 0 : index
    %84 = vector.load %arg1[%83, %c0_25, %c0_26] : memref<50x1x256xf32, #tpu.memory_space<vmem>>, vector<1x1x256xf32>
    %85 = vector.shape_cast %84 : vector<1x1x256xf32> to vector<1x256xf32>
    %86 = tpu.concatenate %80, %85 in 0 : vector<1x256xf32>, vector<1x256xf32> -> vector<2x256xf32>
    %87 = arith.index_cast %74 : i32 to index
    %c0_27 = arith.constant 0 : index
    %88 = memref.load %arg0[%87, %c0_27] : memref<8x2xi32, #tpu.memory_space<smem>>
    %89 = arith.index_cast %88 : i32 to index
    %c0_28 = arith.constant 0 : index
    %c0_29 = arith.constant 0 : index
    %90 = vector.load %arg1[%89, %c0_28, %c0_29] : memref<50x1x256xf32, #tpu.memory_space<vmem>>, vector<1x1x256xf32>
    %91 = vector.shape_cast %90 : vector<1x1x256xf32> to vector<1x256xf32>
    %92 = arith.index_cast %74 : i32 to index
    %c1_30 = arith.constant 1 : index
    %93 = memref.load %arg0[%92, %c1_30] : memref<8x2xi32, #tpu.memory_space<smem>>
    %94 = arith.index_cast %93 : i32 to index
    %c0_31 = arith.constant 0 : index
    %c0_32 = arith.constant 0 : index
    %95 = vector.load %arg1[%94, %c0_31, %c0_32] : memref<50x1x256xf32, #tpu.memory_space<vmem>>, vector<1x1x256xf32>
    %96 = vector.shape_cast %95 : vector<1x1x256xf32> to vector<1x256xf32>
    %97 = tpu.concatenate %91, %96 in 0 : vector<1x256xf32>, vector<1x256xf32> -> vector<2x256xf32>
    %98 = vector.extract_strided_slice %75 {offsets = [0, 0], sizes = [2, 128], strides = [1, 1]} : vector<2x256xf32> to vector<2x128xf32>
    %99 = vector.extract_strided_slice %86 {offsets = [0, 0], sizes = [2, 128], strides = [1, 1]} : vector<2x256xf32> to vector<2x128xf32>
    %100 = arith.addf %98, %99 : vector<2x128xf32>
    %101 = vector.extract_strided_slice %100 {offsets = [0, 0], sizes = [2, 96], strides = [1, 1]} : vector<2x128xf32> to vector<2x96xf32>
    %102 = arith.negf %101 : vector<2x96xf32>
    %103 = math.exp %102 : vector<2x96xf32>
    %cst_33 = arith.constant 1.000000e+00 : f32
    %104 = vector.broadcast %cst_33 : f32 to vector<2x96xf32>
    %105 = arith.addf %104, %103 : vector<2x96xf32>
    %106 = arith.divf %104, %105 : vector<2x96xf32>
    %107 = vector.extract_strided_slice %100 {offsets = [0, 96], sizes = [2, 32], strides = [1, 1]} : vector<2x128xf32> to vector<2x32xf32>
    %108 = math.tanh %107 : vector<2x32xf32>
    %109 = vector.extract_strided_slice %106 {offsets = [0, 32], sizes = [2, 32], strides = [1, 1]} : vector<2x96xf32> to vector<2x32xf32>
    %110 = arith.mulf %109, %42 : vector<2x32xf32>
    %111 = vector.extract_strided_slice %106 {offsets = [0, 0], sizes = [2, 32], strides = [1, 1]} : vector<2x96xf32> to vector<2x32xf32>
    %112 = arith.mulf %111, %108 : vector<2x32xf32>
    %113 = arith.addf %110, %112 : vector<2x32xf32>
    %114 = vector.extract_strided_slice %106 {offsets = [0, 64], sizes = [2, 32], strides = [1, 1]} : vector<2x96xf32> to vector<2x32xf32>
    %115 = math.tanh %113 : vector<2x32xf32>
    %116 = arith.mulf %114, %115 : vector<2x32xf32>
    %117 = vector.extract_strided_slice %75 {offsets = [0, 128], sizes = [2, 128], strides = [1, 1]} : vector<2x256xf32> to vector<2x128xf32>
    %118 = vector.extract_strided_slice %97 {offsets = [0, 128], sizes = [2, 128], strides = [1, 1]} : vector<2x256xf32> to vector<2x128xf32>
    %119 = arith.addf %117, %118 : vector<2x128xf32>
    %120 = vector.extract_strided_slice %119 {offsets = [0, 0], sizes = [2, 96], strides = [1, 1]} : vector<2x128xf32> to vector<2x96xf32>
    %121 = arith.negf %120 : vector<2x96xf32>
    %122 = math.exp %121 : vector<2x96xf32>
    %cst_34 = arith.constant 1.000000e+00 : f32
    %123 = vector.broadcast %cst_34 : f32 to vector<2x96xf32>
    %124 = arith.addf %123, %122 : vector<2x96xf32>
    %125 = arith.divf %123, %124 : vector<2x96xf32>
    %126 = vector.extract_strided_slice %119 {offsets = [0, 96], sizes = [2, 32], strides = [1, 1]} : vector<2x128xf32> to vector<2x32xf32>
    %127 = math.tanh %126 : vector<2x32xf32>
    %128 = vector.extract_strided_slice %125 {offsets = [0, 32], sizes = [2, 32], strides = [1, 1]} : vector<2x96xf32> to vector<2x32xf32>
    %129 = arith.mulf %128, %61 : vector<2x32xf32>
    %130 = vector.extract_strided_slice %125 {offsets = [0, 0], sizes = [2, 32], strides = [1, 1]} : vector<2x96xf32> to vector<2x32xf32>
    %131 = arith.mulf %130, %127 : vector<2x32xf32>
    %132 = arith.addf %129, %131 : vector<2x32xf32>
    %133 = vector.extract_strided_slice %125 {offsets = [0, 64], sizes = [2, 32], strides = [1, 1]} : vector<2x96xf32> to vector<2x32xf32>
    %134 = math.tanh %132 : vector<2x32xf32>
    %135 = arith.mulf %133, %134 : vector<2x32xf32>
    %136 = arith.index_cast %c1_i32 : i32 to index
    %c0_35 = arith.constant 0 : index
    %c0_36 = arith.constant 0 : index
    %137 = vector.load %arg3[%136, %c0_35, %c0_36] : memref<8x2x64xf32, #tpu.memory_space<vmem>>, vector<1x2x32xf32>
    %138 = vector.shape_cast %137 : vector<1x2x32xf32> to vector<2x32xf32>
    %139 = vector.shape_cast %116 : vector<2x32xf32> to vector<1x2x32xf32>
    tpu.vector_store %arg3[%136, %c0_35, %c0_36], %139 {strides = array<i32>} : memref<8x2x64xf32, #tpu.memory_space<vmem>>, vector<1x2x32xf32>,
    %140 = arith.index_cast %74 : i32 to index
    %c0_37 = arith.constant 0 : index
    %c32_38 = arith.constant 32 : index
    %141 = vector.load %arg3[%140, %c0_37, %c32_38] : memref<8x2x64xf32, #tpu.memory_space<vmem>>, vector<1x2x32xf32>
    %142 = vector.shape_cast %141 : vector<1x2x32xf32> to vector<2x32xf32>
    %143 = vector.shape_cast %135 : vector<2x32xf32> to vector<1x2x32xf32>
    tpu.vector_store %arg3[%140, %c0_37, %c32_38], %143 {strides = array<i32>} : memref<8x2x64xf32, #tpu.memory_space<vmem>>, vector<1x2x32xf32>,
    %144 = tpu.concatenate %116, %135 in 1 : vector<2x32xf32>, vector<2x32xf32> -> vector<2x64xf32>
    %c2_i32 = arith.constant 2 : i32
    %c7_i32_39 = arith.constant 7 : i32
    %145 = arith.subi %c7_i32_39, %c2_i32 : i32
    %cst_40 = arith.constant dense<0.000000e+00> : vector<2x256xf32>
    %146 = tpu.matmul %144, %0, %cst_40 {dimension_numbers = #tpu.dot_dimension_numbers<[1], [0], [0], [1], [0, 0, 1, 1], [], []>} : vector<2x64xf32>, vector<64x256xf32>, vector<2x256xf32> -> vector<2x256xf32>
    %147 = arith.index_cast %c2_i32 : i32 to index
    %c0_41 = arith.constant 0 : index
    %148 = memref.load %arg0[%147, %c0_41] : memref<8x2xi32, #tpu.memory_space<smem>>
    %149 = arith.index_cast %148 : i32 to index
    %c0_42 = arith.constant 0 : index
    %c0_43 = arith.constant 0 : index
    %150 = vector.load %arg1[%149, %c0_42, %c0_43] : memref<50x1x256xf32, #tpu.memory_space<vmem>>, vector<1x1x256xf32>
    %151 = vector.shape_cast %150 : vector<1x1x256xf32> to vector<1x256xf32>
    %152 = arith.index_cast %c2_i32 : i32 to index
    %c1_44 = arith.constant 1 : index
    %153 = memref.load %arg0[%152, %c1_44] : memref<8x2xi32, #tpu.memory_space<smem>>
    %154 = arith.index_cast %153 : i32 to index
    %c0_45 = arith.constant 0 : index
    %c0_46 = arith.constant 0 : index
    %155 = vector.load %arg1[%154, %c0_45, %c0_46] : memref<50x1x256xf32, #tpu.memory_space<vmem>>, vector<1x1x256xf32>
    %156 = vector.shape_cast %155 : vector<1x1x256xf32> to vector<1x256xf32>
    %157 = tpu.concatenate %151, %156 in 0 : vector<1x256xf32>, vector<1x256xf32> -> vector<2x256xf32>
    %158 = arith.index_cast %145 : i32 to index
    %c0_47 = arith.constant 0 : index
    %159 = memref.load %arg0[%158, %c0_47] : memref<8x2xi32, #tpu.memory_space<smem>>
    %160 = arith.index_cast %159 : i32 to index
    %c0_48 = arith.constant 0 : index
    %c0_49 = arith.constant 0 : index
    %161 = vector.load %arg1[%160, %c0_48, %c0_49] : memref<50x1x256xf32, #tpu.memory_space<vmem>>, vector<1x1x256xf32>
    %162 = vector.shape_cast %161 : vector<1x1x256xf32> to vector<1x256xf32>
    %163 = arith.index_cast %145 : i32 to index
    %c1_50 = arith.constant 1 : index
    %164 = memref.load %arg0[%163, %c1_50] : memref<8x2xi32, #tpu.memory_space<smem>>
    %165 = arith.index_cast %164 : i32 to index
    %c0_51 = arith.constant 0 : index
    %c0_52 = arith.constant 0 : index
    %166 = vector.load %arg1[%165, %c0_51, %c0_52] : memref<50x1x256xf32, #tpu.memory_space<vmem>>, vector<1x1x256xf32>
    %167 = vector.shape_cast %166 : vector<1x1x256xf32> to vector<1x256xf32>
    %168 = tpu.concatenate %162, %167 in 0 : vector<1x256xf32>, vector<1x256xf32> -> vector<2x256xf32>
    %169 = vector.extract_strided_slice %146 {offsets = [0, 0], sizes = [2, 128], strides = [1, 1]} : vector<2x256xf32> to vector<2x128xf32>
    %170 = vector.extract_strided_slice %157 {offsets = [0, 0], sizes = [2, 128], strides = [1, 1]} : vector<2x256xf32> to vector<2x128xf32>
    %171 = arith.addf %169, %170 : vector<2x128xf32>
    %172 = vector.extract_strided_slice %171 {offsets = [0, 0], sizes = [2, 96], strides = [1, 1]} : vector<2x128xf32> to vector<2x96xf32>
    %173 = arith.negf %172 : vector<2x96xf32>
    %174 = math.exp %173 : vector<2x96xf32>
    %cst_53 = arith.constant 1.000000e+00 : f32
    %175 = vector.broadcast %cst_53 : f32 to vector<2x96xf32>
    %176 = arith.addf %175, %174 : vector<2x96xf32>
    %177 = arith.divf %175, %176 : vector<2x96xf32>
    %178 = vector.extract_strided_slice %171 {offsets = [0, 96], sizes = [2, 32], strides = [1, 1]} : vector<2x128xf32> to vector<2x32xf32>
    %179 = math.tanh %178 : vector<2x32xf32>
    %180 = vector.extract_strided_slice %177 {offsets = [0, 32], sizes = [2, 32], strides = [1, 1]} : vector<2x96xf32> to vector<2x32xf32>
    %181 = arith.mulf %180, %113 : vector<2x32xf32>
    %182 = vector.extract_strided_slice %177 {offsets = [0, 0], sizes = [2, 32], strides = [1, 1]} : vector<2x96xf32> to vector<2x32xf32>
    %183 = arith.mulf %182, %179 : vector<2x32xf32>
    %184 = arith.addf %181, %183 : vector<2x32xf32>
    %185 = vector.extract_strided_slice %177 {offsets = [0, 64], sizes = [2, 32], strides = [1, 1]} : vector<2x96xf32> to vector<2x32xf32>
    %186 = math.tanh %184 : vector<2x32xf32>
    %187 = arith.mulf %185, %186 : vector<2x32xf32>
    %188 = vector.extract_strided_slice %146 {offsets = [0, 128], sizes = [2, 128], strides = [1, 1]} : vector<2x256xf32> to vector<2x128xf32>
    %189 = vector.extract_strided_slice %168 {offsets = [0, 128], sizes = [2, 128], strides = [1, 1]} : vector<2x256xf32> to vector<2x128xf32>
    %190 = arith.addf %188, %189 : vector<2x128xf32>
    %191 = vector.extract_strided_slice %190 {offsets = [0, 0], sizes = [2, 96], strides = [1, 1]} : vector<2x128xf32> to vector<2x96xf32>
    %192 = arith.negf %191 : vector<2x96xf32>
    %193 = math.exp %192 : vector<2x96xf32>
    %cst_54 = arith.constant 1.000000e+00 : f32
    %194 = vector.broadcast %cst_54 : f32 to vector<2x96xf32>
    %195 = arith.addf %194, %193 : vector<2x96xf32>
    %196 = arith.divf %194, %195 : vector<2x96xf32>
    %197 = vector.extract_strided_slice %190 {offsets = [0, 96], sizes = [2, 32], strides = [1, 1]} : vector<2x128xf32> to vector<2x32xf32>
    %198 = math.tanh %197 : vector<2x32xf32>
    %199 = vector.extract_strided_slice %196 {offsets = [0, 32], sizes = [2, 32], strides = [1, 1]} : vector<2x96xf32> to vector<2x32xf32>
    %200 = arith.mulf %199, %132 : vector<2x32xf32>
    %201 = vector.extract_strided_slice %196 {offsets = [0, 0], sizes = [2, 32], strides = [1, 1]} : vector<2x96xf32> to vector<2x32xf32>
    %202 = arith.mulf %201, %198 : vector<2x32xf32>
    %203 = arith.addf %200, %202 : vector<2x32xf32>
    %204 = vector.extract_strided_slice %196 {offsets = [0, 64], sizes = [2, 32], strides = [1, 1]} : vector<2x96xf32> to vector<2x32xf32>
    %205 = math.tanh %203 : vector<2x32xf32>
    %206 = arith.mulf %204, %205 : vector<2x32xf32>
    %207 = arith.index_cast %c2_i32 : i32 to index
    %c0_55 = arith.constant 0 : index
    %c0_56 = arith.constant 0 : index
    %208 = vector.load %arg3[%207, %c0_55, %c0_56] : memref<8x2x64xf32, #tpu.memory_space<vmem>>, vector<1x2x32xf32>
    %209 = vector.shape_cast %208 : vector<1x2x32xf32> to vector<2x32xf32>
    %210 = vector.shape_cast %187 : vector<2x32xf32> to vector<1x2x32xf32>
    tpu.vector_store %arg3[%207, %c0_55, %c0_56], %210 {strides = array<i32>} : memref<8x2x64xf32, #tpu.memory_space<vmem>>, vector<1x2x32xf32>,
    %211 = arith.index_cast %145 : i32 to index
    %c0_57 = arith.constant 0 : index
    %c32_58 = arith.constant 32 : index
    %212 = vector.load %arg3[%211, %c0_57, %c32_58] : memref<8x2x64xf32, #tpu.memory_space<vmem>>, vector<1x2x32xf32>
    %213 = vector.shape_cast %212 : vector<1x2x32xf32> to vector<2x32xf32>
    %214 = vector.shape_cast %206 : vector<2x32xf32> to vector<1x2x32xf32>
    tpu.vector_store %arg3[%211, %c0_57, %c32_58], %214 {strides = array<i32>} : memref<8x2x64xf32, #tpu.memory_space<vmem>>, vector<1x2x32xf32>,
    %215 = tpu.concatenate %187, %206 in 1 : vector<2x32xf32>, vector<2x32xf32> -> vector<2x64xf32>
    %c3_i32 = arith.constant 3 : i32
    %c7_i32_59 = arith.constant 7 : i32
    %216 = arith.subi %c7_i32_59, %c3_i32 : i32
    %cst_60 = arith.constant dense<0.000000e+00> : vector<2x256xf32>
    %217 = tpu.matmul %215, %0, %cst_60 {dimension_numbers = #tpu.dot_dimension_numbers<[1], [0], [0], [1], [0, 0, 1, 1], [], []>} : vector<2x64xf32>, vector<64x256xf32>, vector<2x256xf32> -> vector<2x256xf32>
    %218 = arith.index_cast %c3_i32 : i32 to index
    %c0_61 = arith.constant 0 : index
    %219 = memref.load %arg0[%218, %c0_61] : memref<8x2xi32, #tpu.memory_space<smem>>
    %220 = arith.index_cast %219 : i32 to index
    %c0_62 = arith.constant 0 : index
    %c0_63 = arith.constant 0 : index
    %221 = vector.load %arg1[%220, %c0_62, %c0_63] : memref<50x1x256xf32, #tpu.memory_space<vmem>>, vector<1x1x256xf32>
    %222 = vector.shape_cast %221 : vector<1x1x256xf32> to vector<1x256xf32>
    %223 = arith.index_cast %c3_i32 : i32 to index
    %c1_64 = arith.constant 1 : index
    %224 = memref.load %arg0[%223, %c1_64] : memref<8x2xi32, #tpu.memory_space<smem>>
    %225 = arith.index_cast %224 : i32 to index
    %c0_65 = arith.constant 0 : index
    %c0_66 = arith.constant 0 : index
    %226 = vector.load %arg1[%225, %c0_65, %c0_66] : memref<50x1x256xf32, #tpu.memory_space<vmem>>, vector<1x1x256xf32>
    %227 = vector.shape_cast %226 : vector<1x1x256xf32> to vector<1x256xf32>
    %228 = tpu.concatenate %222, %227 in 0 : vector<1x256xf32>, vector<1x256xf32> -> vector<2x256xf32>
    %229 = arith.index_cast %216 : i32 to index
    %c0_67 = arith.constant 0 : index
    %230 = memref.load %arg0[%229, %c0_67] : memref<8x2xi32, #tpu.memory_space<smem>>
    %231 = arith.index_cast %230 : i32 to index
    %c0_68 = arith.constant 0 : index
    %c0_69 = arith.constant 0 : index
    %232 = vector.load %arg1[%231, %c0_68, %c0_69] : memref<50x1x256xf32, #tpu.memory_space<vmem>>, vector<1x1x256xf32>
    %233 = vector.shape_cast %232 : vector<1x1x256xf32> to vector<1x256xf32>
    %234 = arith.index_cast %216 : i32 to index
    %c1_70 = arith.constant 1 : index
    %235 = memref.load %arg0[%234, %c1_70] : memref<8x2xi32, #tpu.memory_space<smem>>
    %236 = arith.index_cast %235 : i32 to index
    %c0_71 = arith.constant 0 : index
    %c0_72 = arith.constant 0 : index
    %237 = vector.load %arg1[%236, %c0_71, %c0_72] : memref<50x1x256xf32, #tpu.memory_space<vmem>>, vector<1x1x256xf32>
    %238 = vector.shape_cast %237 : vector<1x1x256xf32> to vector<1x256xf32>
    %239 = tpu.concatenate %233, %238 in 0 : vector<1x256xf32>, vector<1x256xf32> -> vector<2x256xf32>
    %240 = vector.extract_strided_slice %217 {offsets = [0, 0], sizes = [2, 128], strides = [1, 1]} : vector<2x256xf32> to vector<2x128xf32>
    %241 = vector.extract_strided_slice %228 {offsets = [0, 0], sizes = [2, 128], strides = [1, 1]} : vector<2x256xf32> to vector<2x128xf32>
    %242 = arith.addf %240, %241 : vector<2x128xf32>
    %243 = vector.extract_strided_slice %242 {offsets = [0, 0], sizes = [2, 96], strides = [1, 1]} : vector<2x128xf32> to vector<2x96xf32>
    %244 = arith.negf %243 : vector<2x96xf32>
    %245 = math.exp %244 : vector<2x96xf32>
    %cst_73 = arith.constant 1.000000e+00 : f32
    %246 = vector.broadcast %cst_73 : f32 to vector<2x96xf32>
    %247 = arith.addf %246, %245 : vector<2x96xf32>
    %248 = arith.divf %246, %247 : vector<2x96xf32>
    %249 = vector.extract_strided_slice %242 {offsets = [0, 96], sizes = [2, 32], strides = [1, 1]} : vector<2x128xf32> to vector<2x32xf32>
    %250 = math.tanh %249 : vector<2x32xf32>
    %251 = vector.extract_strided_slice %248 {offsets = [0, 32], sizes = [2, 32], strides = [1, 1]} : vector<2x96xf32> to vector<2x32xf32>
    %252 = arith.mulf %251, %184 : vector<2x32xf32>
    %253 = vector.extract_strided_slice %248 {offsets = [0, 0], sizes = [2, 32], strides = [1, 1]} : vector<2x96xf32> to vector<2x32xf32>
    %254 = arith.mulf %253, %250 : vector<2x32xf32>
    %255 = arith.addf %252, %254 : vector<2x32xf32>
    %256 = vector.extract_strided_slice %248 {offsets = [0, 64], sizes = [2, 32], strides = [1, 1]} : vector<2x96xf32> to vector<2x32xf32>
    %257 = math.tanh %255 : vector<2x32xf32>
    %258 = arith.mulf %256, %257 : vector<2x32xf32>
    %259 = vector.extract_strided_slice %217 {offsets = [0, 128], sizes = [2, 128], strides = [1, 1]} : vector<2x256xf32> to vector<2x128xf32>
    %260 = vector.extract_strided_slice %239 {offsets = [0, 128], sizes = [2, 128], strides = [1, 1]} : vector<2x256xf32> to vector<2x128xf32>
    %261 = arith.addf %259, %260 : vector<2x128xf32>
    %262 = vector.extract_strided_slice %261 {offsets = [0, 0], sizes = [2, 96], strides = [1, 1]} : vector<2x128xf32> to vector<2x96xf32>
    %263 = arith.negf %262 : vector<2x96xf32>
    %264 = math.exp %263 : vector<2x96xf32>
    %cst_74 = arith.constant 1.000000e+00 : f32
    %265 = vector.broadcast %cst_74 : f32 to vector<2x96xf32>
    %266 = arith.addf %265, %264 : vector<2x96xf32>
    %267 = arith.divf %265, %266 : vector<2x96xf32>
    %268 = vector.extract_strided_slice %261 {offsets = [0, 96], sizes = [2, 32], strides = [1, 1]} : vector<2x128xf32> to vector<2x32xf32>
    %269 = math.tanh %268 : vector<2x32xf32>
    %270 = vector.extract_strided_slice %267 {offsets = [0, 32], sizes = [2, 32], strides = [1, 1]} : vector<2x96xf32> to vector<2x32xf32>
    %271 = arith.mulf %270, %203 : vector<2x32xf32>
    %272 = vector.extract_strided_slice %267 {offsets = [0, 0], sizes = [2, 32], strides = [1, 1]} : vector<2x96xf32> to vector<2x32xf32>
    %273 = arith.mulf %272, %269 : vector<2x32xf32>
    %274 = arith.addf %271, %273 : vector<2x32xf32>
    %275 = vector.extract_strided_slice %267 {offsets = [0, 64], sizes = [2, 32], strides = [1, 1]} : vector<2x96xf32> to vector<2x32xf32>
    %276 = math.tanh %274 : vector<2x32xf32>
    %277 = arith.mulf %275, %276 : vector<2x32xf32>
    %278 = arith.index_cast %c3_i32 : i32 to index
    %c0_75 = arith.constant 0 : index
    %c0_76 = arith.constant 0 : index
    %279 = vector.load %arg3[%278, %c0_75, %c0_76] : memref<8x2x64xf32, #tpu.memory_space<vmem>>, vector<1x2x32xf32>
    %280 = vector.shape_cast %279 : vector<1x2x32xf32> to vector<2x32xf32>
    %281 = vector.shape_cast %258 : vector<2x32xf32> to vector<1x2x32xf32>
    tpu.vector_store %arg3[%278, %c0_75, %c0_76], %281 {strides = array<i32>} : memref<8x2x64xf32, #tpu.memory_space<vmem>>, vector<1x2x32xf32>,
    %282 = arith.index_cast %216 : i32 to index
    %c0_77 = arith.constant 0 : index
    %c32_78 = arith.constant 32 : index
    %283 = vector.load %arg3[%282, %c0_77, %c32_78] : memref<8x2x64xf32, #tpu.memory_space<vmem>>, vector<1x2x32xf32>
    %284 = vector.shape_cast %283 : vector<1x2x32xf32> to vector<2x32xf32>
    %285 = vector.shape_cast %277 : vector<2x32xf32> to vector<1x2x32xf32>
    tpu.vector_store %arg3[%282, %c0_77, %c32_78], %285 {strides = array<i32>} : memref<8x2x64xf32, #tpu.memory_space<vmem>>, vector<1x2x32xf32>,
    %286 = tpu.concatenate %258, %277 in 1 : vector<2x32xf32>, vector<2x32xf32> -> vector<2x64xf32>
    %c4_i32 = arith.constant 4 : i32
    %c7_i32_79 = arith.constant 7 : i32
    %287 = arith.subi %c7_i32_79, %c4_i32 : i32
    %cst_80 = arith.constant dense<0.000000e+00> : vector<2x256xf32>
    %288 = tpu.matmul %286, %0, %cst_80 {dimension_numbers = #tpu.dot_dimension_numbers<[1], [0], [0], [1], [0, 0, 1, 1], [], []>} : vector<2x64xf32>, vector<64x256xf32>, vector<2x256xf32> -> vector<2x256xf32>
    %289 = arith.index_cast %c4_i32 : i32 to index
    %c0_81 = arith.constant 0 : index
    %290 = memref.load %arg0[%289, %c0_81] : memref<8x2xi32, #tpu.memory_space<smem>>
    %291 = arith.index_cast %290 : i32 to index
    %c0_82 = arith.constant 0 : index
    %c0_83 = arith.constant 0 : index
    %292 = vector.load %arg1[%291, %c0_82, %c0_83] : memref<50x1x256xf32, #tpu.memory_space<vmem>>, vector<1x1x256xf32>
    %293 = vector.shape_cast %292 : vector<1x1x256xf32> to vector<1x256xf32>
    %294 = arith.index_cast %c4_i32 : i32 to index
    %c1_84 = arith.constant 1 : index
    %295 = memref.load %arg0[%294, %c1_84] : memref<8x2xi32, #tpu.memory_space<smem>>
    %296 = arith.index_cast %295 : i32 to index
    %c0_85 = arith.constant 0 : index
    %c0_86 = arith.constant 0 : index
    %297 = vector.load %arg1[%296, %c0_85, %c0_86] : memref<50x1x256xf32, #tpu.memory_space<vmem>>, vector<1x1x256xf32>
    %298 = vector.shape_cast %297 : vector<1x1x256xf32> to vector<1x256xf32>
    %299 = tpu.concatenate %293, %298 in 0 : vector<1x256xf32>, vector<1x256xf32> -> vector<2x256xf32>
    %300 = arith.index_cast %287 : i32 to index
    %c0_87 = arith.constant 0 : index
    %301 = memref.load %arg0[%300, %c0_87] : memref<8x2xi32, #tpu.memory_space<smem>>
    %302 = arith.index_cast %301 : i32 to index
    %c0_88 = arith.constant 0 : index
    %c0_89 = arith.constant 0 : index
    %303 = vector.load %arg1[%302, %c0_88, %c0_89] : memref<50x1x256xf32, #tpu.memory_space<vmem>>, vector<1x1x256xf32>
    %304 = vector.shape_cast %303 : vector<1x1x256xf32> to vector<1x256xf32>
    %305 = arith.index_cast %287 : i32 to index
    %c1_90 = arith.constant 1 : index
    %306 = memref.load %arg0[%305, %c1_90] : memref<8x2xi32, #tpu.memory_space<smem>>
    %307 = arith.index_cast %306 : i32 to index
    %c0_91 = arith.constant 0 : index
    %c0_92 = arith.constant 0 : index
    %308 = vector.load %arg1[%307, %c0_91, %c0_92] : memref<50x1x256xf32, #tpu.memory_space<vmem>>, vector<1x1x256xf32>
    %309 = vector.shape_cast %308 : vector<1x1x256xf32> to vector<1x256xf32>
    %310 = tpu.concatenate %304, %309 in 0 : vector<1x256xf32>, vector<1x256xf32> -> vector<2x256xf32>
    %311 = vector.extract_strided_slice %288 {offsets = [0, 0], sizes = [2, 128], strides = [1, 1]} : vector<2x256xf32> to vector<2x128xf32>
    %312 = vector.extract_strided_slice %299 {offsets = [0, 0], sizes = [2, 128], strides = [1, 1]} : vector<2x256xf32> to vector<2x128xf32>
    %313 = arith.addf %311, %312 : vector<2x128xf32>
    %314 = vector.extract_strided_slice %313 {offsets = [0, 0], sizes = [2, 96], strides = [1, 1]} : vector<2x128xf32> to vector<2x96xf32>
    %315 = arith.negf %314 : vector<2x96xf32>
    %316 = math.exp %315 : vector<2x96xf32>
    %cst_93 = arith.constant 1.000000e+00 : f32
    %317 = vector.broadcast %cst_93 : f32 to vector<2x96xf32>
    %318 = arith.addf %317, %316 : vector<2x96xf32>
    %319 = arith.divf %317, %318 : vector<2x96xf32>
    %320 = vector.extract_strided_slice %313 {offsets = [0, 96], sizes = [2, 32], strides = [1, 1]} : vector<2x128xf32> to vector<2x32xf32>
    %321 = math.tanh %320 : vector<2x32xf32>
    %322 = vector.extract_strided_slice %319 {offsets = [0, 32], sizes = [2, 32], strides = [1, 1]} : vector<2x96xf32> to vector<2x32xf32>
    %323 = arith.mulf %322, %255 : vector<2x32xf32>
    %324 = vector.extract_strided_slice %319 {offsets = [0, 0], sizes = [2, 32], strides = [1, 1]} : vector<2x96xf32> to vector<2x32xf32>
    %325 = arith.mulf %324, %321 : vector<2x32xf32>
    %326 = arith.addf %323, %325 : vector<2x32xf32>
    %327 = vector.extract_strided_slice %319 {offsets = [0, 64], sizes = [2, 32], strides = [1, 1]} : vector<2x96xf32> to vector<2x32xf32>
    %328 = math.tanh %326 : vector<2x32xf32>
    %329 = arith.mulf %327, %328 : vector<2x32xf32>
    %330 = vector.extract_strided_slice %288 {offsets = [0, 128], sizes = [2, 128], strides = [1, 1]} : vector<2x256xf32> to vector<2x128xf32>
    %331 = vector.extract_strided_slice %310 {offsets = [0, 128], sizes = [2, 128], strides = [1, 1]} : vector<2x256xf32> to vector<2x128xf32>
    %332 = arith.addf %330, %331 : vector<2x128xf32>
    %333 = vector.extract_strided_slice %332 {offsets = [0, 0], sizes = [2, 96], strides = [1, 1]} : vector<2x128xf32> to vector<2x96xf32>
    %334 = arith.negf %333 : vector<2x96xf32>
    %335 = math.exp %334 : vector<2x96xf32>
    %cst_94 = arith.constant 1.000000e+00 : f32
    %336 = vector.broadcast %cst_94 : f32 to vector<2x96xf32>
    %337 = arith.addf %336, %335 : vector<2x96xf32>
    %338 = arith.divf %336, %337 : vector<2x96xf32>
    %339 = vector.extract_strided_slice %332 {offsets = [0, 96], sizes = [2, 32], strides = [1, 1]} : vector<2x128xf32> to vector<2x32xf32>
    %340 = math.tanh %339 : vector<2x32xf32>
    %341 = vector.extract_strided_slice %338 {offsets = [0, 32], sizes = [2, 32], strides = [1, 1]} : vector<2x96xf32> to vector<2x32xf32>
    %342 = arith.mulf %341, %274 : vector<2x32xf32>
    %343 = vector.extract_strided_slice %338 {offsets = [0, 0], sizes = [2, 32], strides = [1, 1]} : vector<2x96xf32> to vector<2x32xf32>
    %344 = arith.mulf %343, %340 : vector<2x32xf32>
    %345 = arith.addf %342, %344 : vector<2x32xf32>
    %346 = vector.extract_strided_slice %338 {offsets = [0, 64], sizes = [2, 32], strides = [1, 1]} : vector<2x96xf32> to vector<2x32xf32>
    %347 = math.tanh %345 : vector<2x32xf32>
    %348 = arith.mulf %346, %347 : vector<2x32xf32>
    %349 = arith.index_cast %c4_i32 : i32 to index
    %c0_95 = arith.constant 0 : index
    %c0_96 = arith.constant 0 : index
    %350 = vector.load %arg3[%349, %c0_95, %c0_96] : memref<8x2x64xf32, #tpu.memory_space<vmem>>, vector<1x2x32xf32>
    %351 = vector.shape_cast %350 : vector<1x2x32xf32> to vector<2x32xf32>
    %352 = vector.shape_cast %329 : vector<2x32xf32> to vector<1x2x32xf32>
    tpu.vector_store %arg3[%349, %c0_95, %c0_96], %352 {strides = array<i32>} : memref<8x2x64xf32, #tpu.memory_space<vmem>>, vector<1x2x32xf32>,
    %353 = arith.index_cast %287 : i32 to index
    %c0_97 = arith.constant 0 : index
    %c32_98 = arith.constant 32 : index
    %354 = vector.load %arg3[%353, %c0_97, %c32_98] : memref<8x2x64xf32, #tpu.memory_space<vmem>>, vector<1x2x32xf32>
    %355 = vector.shape_cast %354 : vector<1x2x32xf32> to vector<2x32xf32>
    %356 = vector.shape_cast %348 : vector<2x32xf32> to vector<1x2x32xf32>
    tpu.vector_store %arg3[%353, %c0_97, %c32_98], %356 {strides = array<i32>} : memref<8x2x64xf32, #tpu.memory_space<vmem>>, vector<1x2x32xf32>,
    %357 = tpu.concatenate %329, %348 in 1 : vector<2x32xf32>, vector<2x32xf32> -> vector<2x64xf32>
    %c5_i32 = arith.constant 5 : i32
    %c7_i32_99 = arith.constant 7 : i32
    %358 = arith.subi %c7_i32_99, %c5_i32 : i32
    %cst_100 = arith.constant dense<0.000000e+00> : vector<2x256xf32>
    %359 = tpu.matmul %357, %0, %cst_100 {dimension_numbers = #tpu.dot_dimension_numbers<[1], [0], [0], [1], [0, 0, 1, 1], [], []>} : vector<2x64xf32>, vector<64x256xf32>, vector<2x256xf32> -> vector<2x256xf32>
    %360 = arith.index_cast %c5_i32 : i32 to index
    %c0_101 = arith.constant 0 : index
    %361 = memref.load %arg0[%360, %c0_101] : memref<8x2xi32, #tpu.memory_space<smem>>
    %362 = arith.index_cast %361 : i32 to index
    %c0_102 = arith.constant 0 : index
    %c0_103 = arith.constant 0 : index
    %363 = vector.load %arg1[%362, %c0_102, %c0_103] : memref<50x1x256xf32, #tpu.memory_space<vmem>>, vector<1x1x256xf32>
    %364 = vector.shape_cast %363 : vector<1x1x256xf32> to vector<1x256xf32>
    %365 = arith.index_cast %c5_i32 : i32 to index
    %c1_104 = arith.constant 1 : index
    %366 = memref.load %arg0[%365, %c1_104] : memref<8x2xi32, #tpu.memory_space<smem>>
    %367 = arith.index_cast %366 : i32 to index
    %c0_105 = arith.constant 0 : index
    %c0_106 = arith.constant 0 : index
    %368 = vector.load %arg1[%367, %c0_105, %c0_106] : memref<50x1x256xf32, #tpu.memory_space<vmem>>, vector<1x1x256xf32>
    %369 = vector.shape_cast %368 : vector<1x1x256xf32> to vector<1x256xf32>
    %370 = tpu.concatenate %364, %369 in 0 : vector<1x256xf32>, vector<1x256xf32> -> vector<2x256xf32>
    %371 = arith.index_cast %358 : i32 to index
    %c0_107 = arith.constant 0 : index
    %372 = memref.load %arg0[%371, %c0_107] : memref<8x2xi32, #tpu.memory_space<smem>>
    %373 = arith.index_cast %372 : i32 to index
    %c0_108 = arith.constant 0 : index
    %c0_109 = arith.constant 0 : index
    %374 = vector.load %arg1[%373, %c0_108, %c0_109] : memref<50x1x256xf32, #tpu.memory_space<vmem>>, vector<1x1x256xf32>
    %375 = vector.shape_cast %374 : vector<1x1x256xf32> to vector<1x256xf32>
    %376 = arith.index_cast %358 : i32 to index
    %c1_110 = arith.constant 1 : index
    %377 = memref.load %arg0[%376, %c1_110] : memref<8x2xi32, #tpu.memory_space<smem>>
    %378 = arith.index_cast %377 : i32 to index
    %c0_111 = arith.constant 0 : index
    %c0_112 = arith.constant 0 : index
    %379 = vector.load %arg1[%378, %c0_111, %c0_112] : memref<50x1x256xf32, #tpu.memory_space<vmem>>, vector<1x1x256xf32>
    %380 = vector.shape_cast %379 : vector<1x1x256xf32> to vector<1x256xf32>
    %381 = tpu.concatenate %375, %380 in 0 : vector<1x256xf32>, vector<1x256xf32> -> vector<2x256xf32>
    %382 = vector.extract_strided_slice %359 {offsets = [0, 0], sizes = [2, 128], strides = [1, 1]} : vector<2x256xf32> to vector<2x128xf32>
    %383 = vector.extract_strided_slice %370 {offsets = [0, 0], sizes = [2, 128], strides = [1, 1]} : vector<2x256xf32> to vector<2x128xf32>
    %384 = arith.addf %382, %383 : vector<2x128xf32>
    %385 = vector.extract_strided_slice %384 {offsets = [0, 0], sizes = [2, 96], strides = [1, 1]} : vector<2x128xf32> to vector<2x96xf32>
    %386 = arith.negf %385 : vector<2x96xf32>
    %387 = math.exp %386 : vector<2x96xf32>
    %cst_113 = arith.constant 1.000000e+00 : f32
    %388 = vector.broadcast %cst_113 : f32 to vector<2x96xf32>
    %389 = arith.addf %388, %387 : vector<2x96xf32>
    %390 = arith.divf %388, %389 : vector<2x96xf32>
    %391 = vector.extract_strided_slice %384 {offsets = [0, 96], sizes = [2, 32], strides = [1, 1]} : vector<2x128xf32> to vector<2x32xf32>
    %392 = math.tanh %391 : vector<2x32xf32>
    %393 = vector.extract_strided_slice %390 {offsets = [0, 32], sizes = [2, 32], strides = [1, 1]} : vector<2x96xf32> to vector<2x32xf32>
    %394 = arith.mulf %393, %326 : vector<2x32xf32>
    %395 = vector.extract_strided_slice %390 {offsets = [0, 0], sizes = [2, 32], strides = [1, 1]} : vector<2x96xf32> to vector<2x32xf32>
    %396 = arith.mulf %395, %392 : vector<2x32xf32>
    %397 = arith.addf %394, %396 : vector<2x32xf32>
    %398 = vector.extract_strided_slice %390 {offsets = [0, 64], sizes = [2, 32], strides = [1, 1]} : vector<2x96xf32> to vector<2x32xf32>
    %399 = math.tanh %397 : vector<2x32xf32>
    %400 = arith.mulf %398, %399 : vector<2x32xf32>
    %401 = vector.extract_strided_slice %359 {offsets = [0, 128], sizes = [2, 128], strides = [1, 1]} : vector<2x256xf32> to vector<2x128xf32>
    %402 = vector.extract_strided_slice %381 {offsets = [0, 128], sizes = [2, 128], strides = [1, 1]} : vector<2x256xf32> to vector<2x128xf32>
    %403 = arith.addf %401, %402 : vector<2x128xf32>
    %404 = vector.extract_strided_slice %403 {offsets = [0, 0], sizes = [2, 96], strides = [1, 1]} : vector<2x128xf32> to vector<2x96xf32>
    %405 = arith.negf %404 : vector<2x96xf32>
    %406 = math.exp %405 : vector<2x96xf32>
    %cst_114 = arith.constant 1.000000e+00 : f32
    %407 = vector.broadcast %cst_114 : f32 to vector<2x96xf32>
    %408 = arith.addf %407, %406 : vector<2x96xf32>
    %409 = arith.divf %407, %408 : vector<2x96xf32>
    %410 = vector.extract_strided_slice %403 {offsets = [0, 96], sizes = [2, 32], strides = [1, 1]} : vector<2x128xf32> to vector<2x32xf32>
    %411 = math.tanh %410 : vector<2x32xf32>
    %412 = vector.extract_strided_slice %409 {offsets = [0, 32], sizes = [2, 32], strides = [1, 1]} : vector<2x96xf32> to vector<2x32xf32>
    %413 = arith.mulf %412, %345 : vector<2x32xf32>
    %414 = vector.extract_strided_slice %409 {offsets = [0, 0], sizes = [2, 32], strides = [1, 1]} : vector<2x96xf32> to vector<2x32xf32>
    %415 = arith.mulf %414, %411 : vector<2x32xf32>
    %416 = arith.addf %413, %415 : vector<2x32xf32>
    %417 = vector.extract_strided_slice %409 {offsets = [0, 64], sizes = [2, 32], strides = [1, 1]} : vector<2x96xf32> to vector<2x32xf32>
    %418 = math.tanh %416 : vector<2x32xf32>
    %419 = arith.mulf %417, %418 : vector<2x32xf32>
    %420 = arith.index_cast %c5_i32 : i32 to index
    %c0_115 = arith.constant 0 : index
    %c0_116 = arith.constant 0 : index
    %421 = vector.load %arg3[%420, %c0_115, %c0_116] : memref<8x2x64xf32, #tpu.memory_space<vmem>>, vector<1x2x32xf32>
    %422 = vector.shape_cast %421 : vector<1x2x32xf32> to vector<2x32xf32>
    %423 = vector.shape_cast %400 : vector<2x32xf32> to vector<1x2x32xf32>
    tpu.vector_store %arg3[%420, %c0_115, %c0_116], %423 {strides = array<i32>} : memref<8x2x64xf32, #tpu.memory_space<vmem>>, vector<1x2x32xf32>,
    %424 = arith.index_cast %358 : i32 to index
    %c0_117 = arith.constant 0 : index
    %c32_118 = arith.constant 32 : index
    %425 = vector.load %arg3[%424, %c0_117, %c32_118] : memref<8x2x64xf32, #tpu.memory_space<vmem>>, vector<1x2x32xf32>
    %426 = vector.shape_cast %425 : vector<1x2x32xf32> to vector<2x32xf32>
    %427 = vector.shape_cast %419 : vector<2x32xf32> to vector<1x2x32xf32>
    tpu.vector_store %arg3[%424, %c0_117, %c32_118], %427 {strides = array<i32>} : memref<8x2x64xf32, #tpu.memory_space<vmem>>, vector<1x2x32xf32>,
    %428 = tpu.concatenate %400, %419 in 1 : vector<2x32xf32>, vector<2x32xf32> -> vector<2x64xf32>
    %c6_i32 = arith.constant 6 : i32
    %c7_i32_119 = arith.constant 7 : i32
    %429 = arith.subi %c7_i32_119, %c6_i32 : i32
    %cst_120 = arith.constant dense<0.000000e+00> : vector<2x256xf32>
    %430 = tpu.matmul %428, %0, %cst_120 {dimension_numbers = #tpu.dot_dimension_numbers<[1], [0], [0], [1], [0, 0, 1, 1], [], []>} : vector<2x64xf32>, vector<64x256xf32>, vector<2x256xf32> -> vector<2x256xf32>
    %431 = arith.index_cast %c6_i32 : i32 to index
    %c0_121 = arith.constant 0 : index
    %432 = memref.load %arg0[%431, %c0_121] : memref<8x2xi32, #tpu.memory_space<smem>>
    %433 = arith.index_cast %432 : i32 to index
    %c0_122 = arith.constant 0 : index
    %c0_123 = arith.constant 0 : index
    %434 = vector.load %arg1[%433, %c0_122, %c0_123] : memref<50x1x256xf32, #tpu.memory_space<vmem>>, vector<1x1x256xf32>
    %435 = vector.shape_cast %434 : vector<1x1x256xf32> to vector<1x256xf32>
    %436 = arith.index_cast %c6_i32 : i32 to index
    %c1_124 = arith.constant 1 : index
    %437 = memref.load %arg0[%436, %c1_124] : memref<8x2xi32, #tpu.memory_space<smem>>
    %438 = arith.index_cast %437 : i32 to index
    %c0_125 = arith.constant 0 : index
    %c0_126 = arith.constant 0 : index
    %439 = vector.load %arg1[%438, %c0_125, %c0_126] : memref<50x1x256xf32, #tpu.memory_space<vmem>>, vector<1x1x256xf32>
    %440 = vector.shape_cast %439 : vector<1x1x256xf32> to vector<1x256xf32>
    %441 = tpu.concatenate %435, %440 in 0 : vector<1x256xf32>, vector<1x256xf32> -> vector<2x256xf32>
    %442 = arith.index_cast %429 : i32 to index
    %c0_127 = arith.constant 0 : index
    %443 = memref.load %arg0[%442, %c0_127] : memref<8x2xi32, #tpu.memory_space<smem>>
    %444 = arith.index_cast %443 : i32 to index
    %c0_128 = arith.constant 0 : index
    %c0_129 = arith.constant 0 : index
    %445 = vector.load %arg1[%444, %c0_128, %c0_129] : memref<50x1x256xf32, #tpu.memory_space<vmem>>, vector<1x1x256xf32>
    %446 = vector.shape_cast %445 : vector<1x1x256xf32> to vector<1x256xf32>
    %447 = arith.index_cast %429 : i32 to index
    %c1_130 = arith.constant 1 : index
    %448 = memref.load %arg0[%447, %c1_130] : memref<8x2xi32, #tpu.memory_space<smem>>
    %449 = arith.index_cast %448 : i32 to index
    %c0_131 = arith.constant 0 : index
    %c0_132 = arith.constant 0 : index
    %450 = vector.load %arg1[%449, %c0_131, %c0_132] : memref<50x1x256xf32, #tpu.memory_space<vmem>>, vector<1x1x256xf32>
    %451 = vector.shape_cast %450 : vector<1x1x256xf32> to vector<1x256xf32>
    %452 = tpu.concatenate %446, %451 in 0 : vector<1x256xf32>, vector<1x256xf32> -> vector<2x256xf32>
    %453 = vector.extract_strided_slice %430 {offsets = [0, 0], sizes = [2, 128], strides = [1, 1]} : vector<2x256xf32> to vector<2x128xf32>
    %454 = vector.extract_strided_slice %441 {offsets = [0, 0], sizes = [2, 128], strides = [1, 1]} : vector<2x256xf32> to vector<2x128xf32>
    %455 = arith.addf %453, %454 : vector<2x128xf32>
    %456 = vector.extract_strided_slice %455 {offsets = [0, 0], sizes = [2, 96], strides = [1, 1]} : vector<2x128xf32> to vector<2x96xf32>
    %457 = arith.negf %456 : vector<2x96xf32>
    %458 = math.exp %457 : vector<2x96xf32>
    %cst_133 = arith.constant 1.000000e+00 : f32
    %459 = vector.broadcast %cst_133 : f32 to vector<2x96xf32>
    %460 = arith.addf %459, %458 : vector<2x96xf32>
    %461 = arith.divf %459, %460 : vector<2x96xf32>
    %462 = vector.extract_strided_slice %455 {offsets = [0, 96], sizes = [2, 32], strides = [1, 1]} : vector<2x128xf32> to vector<2x32xf32>
    %463 = math.tanh %462 : vector<2x32xf32>
    %464 = vector.extract_strided_slice %461 {offsets = [0, 32], sizes = [2, 32], strides = [1, 1]} : vector<2x96xf32> to vector<2x32xf32>
    %465 = arith.mulf %464, %397 : vector<2x32xf32>
    %466 = vector.extract_strided_slice %461 {offsets = [0, 0], sizes = [2, 32], strides = [1, 1]} : vector<2x96xf32> to vector<2x32xf32>
    %467 = arith.mulf %466, %463 : vector<2x32xf32>
    %468 = arith.addf %465, %467 : vector<2x32xf32>
    %469 = vector.extract_strided_slice %461 {offsets = [0, 64], sizes = [2, 32], strides = [1, 1]} : vector<2x96xf32> to vector<2x32xf32>
    %470 = math.tanh %468 : vector<2x32xf32>
    %471 = arith.mulf %469, %470 : vector<2x32xf32>
    %472 = vector.extract_strided_slice %430 {offsets = [0, 128], sizes = [2, 128], strides = [1, 1]} : vector<2x256xf32> to vector<2x128xf32>
    %473 = vector.extract_strided_slice %452 {offsets = [0, 128], sizes = [2, 128], strides = [1, 1]} : vector<2x256xf32> to vector<2x128xf32>
    %474 = arith.addf %472, %473 : vector<2x128xf32>
    %475 = vector.extract_strided_slice %474 {offsets = [0, 0], sizes = [2, 96], strides = [1, 1]} : vector<2x128xf32> to vector<2x96xf32>
    %476 = arith.negf %475 : vector<2x96xf32>
    %477 = math.exp %476 : vector<2x96xf32>
    %cst_134 = arith.constant 1.000000e+00 : f32
    %478 = vector.broadcast %cst_134 : f32 to vector<2x96xf32>
    %479 = arith.addf %478, %477 : vector<2x96xf32>
    %480 = arith.divf %478, %479 : vector<2x96xf32>
    %481 = vector.extract_strided_slice %474 {offsets = [0, 96], sizes = [2, 32], strides = [1, 1]} : vector<2x128xf32> to vector<2x32xf32>
    %482 = math.tanh %481 : vector<2x32xf32>
    %483 = vector.extract_strided_slice %480 {offsets = [0, 32], sizes = [2, 32], strides = [1, 1]} : vector<2x96xf32> to vector<2x32xf32>
    %484 = arith.mulf %483, %416 : vector<2x32xf32>
    %485 = vector.extract_strided_slice %480 {offsets = [0, 0], sizes = [2, 32], strides = [1, 1]} : vector<2x96xf32> to vector<2x32xf32>
    %486 = arith.mulf %485, %482 : vector<2x32xf32>
    %487 = arith.addf %484, %486 : vector<2x32xf32>
    %488 = vector.extract_strided_slice %480 {offsets = [0, 64], sizes = [2, 32], strides = [1, 1]} : vector<2x96xf32> to vector<2x32xf32>
    %489 = math.tanh %487 : vector<2x32xf32>
    %490 = arith.mulf %488, %489 : vector<2x32xf32>
    %491 = arith.index_cast %c6_i32 : i32 to index
    %c0_135 = arith.constant 0 : index
    %c0_136 = arith.constant 0 : index
    %492 = vector.load %arg3[%491, %c0_135, %c0_136] : memref<8x2x64xf32, #tpu.memory_space<vmem>>, vector<1x2x32xf32>
    %493 = vector.shape_cast %492 : vector<1x2x32xf32> to vector<2x32xf32>
    %494 = vector.shape_cast %471 : vector<2x32xf32> to vector<1x2x32xf32>
    tpu.vector_store %arg3[%491, %c0_135, %c0_136], %494 {strides = array<i32>} : memref<8x2x64xf32, #tpu.memory_space<vmem>>, vector<1x2x32xf32>,
    %495 = arith.index_cast %429 : i32 to index
    %c0_137 = arith.constant 0 : index
    %c32_138 = arith.constant 32 : index
    %496 = vector.load %arg3[%495, %c0_137, %c32_138] : memref<8x2x64xf32, #tpu.memory_space<vmem>>, vector<1x2x32xf32>
    %497 = vector.shape_cast %496 : vector<1x2x32xf32> to vector<2x32xf32>
    %498 = vector.shape_cast %490 : vector<2x32xf32> to vector<1x2x32xf32>
    tpu.vector_store %arg3[%495, %c0_137, %c32_138], %498 {strides = array<i32>} : memref<8x2x64xf32, #tpu.memory_space<vmem>>, vector<1x2x32xf32>,
    %499 = tpu.concatenate %471, %490 in 1 : vector<2x32xf32>, vector<2x32xf32> -> vector<2x64xf32>
    %c7_i32_139 = arith.constant 7 : i32
    %c7_i32_140 = arith.constant 7 : i32
    %500 = arith.subi %c7_i32_140, %c7_i32_139 : i32
    %cst_141 = arith.constant dense<0.000000e+00> : vector<2x256xf32>
    %501 = tpu.matmul %499, %0, %cst_141 {dimension_numbers = #tpu.dot_dimension_numbers<[1], [0], [0], [1], [0, 0, 1, 1], [], []>} : vector<2x64xf32>, vector<64x256xf32>, vector<2x256xf32> -> vector<2x256xf32>
    %502 = arith.index_cast %c7_i32_139 : i32 to index
    %c0_142 = arith.constant 0 : index
    %503 = memref.load %arg0[%502, %c0_142] : memref<8x2xi32, #tpu.memory_space<smem>>
    %504 = arith.index_cast %503 : i32 to index
    %c0_143 = arith.constant 0 : index
    %c0_144 = arith.constant 0 : index
    %505 = vector.load %arg1[%504, %c0_143, %c0_144] : memref<50x1x256xf32, #tpu.memory_space<vmem>>, vector<1x1x256xf32>
    %506 = vector.shape_cast %505 : vector<1x1x256xf32> to vector<1x256xf32>
    %507 = arith.index_cast %c7_i32_139 : i32 to index
    %c1_145 = arith.constant 1 : index
    %508 = memref.load %arg0[%507, %c1_145] : memref<8x2xi32, #tpu.memory_space<smem>>
    %509 = arith.index_cast %508 : i32 to index
    %c0_146 = arith.constant 0 : index
    %c0_147 = arith.constant 0 : index
    %510 = vector.load %arg1[%509, %c0_146, %c0_147] : memref<50x1x256xf32, #tpu.memory_space<vmem>>, vector<1x1x256xf32>
    %511 = vector.shape_cast %510 : vector<1x1x256xf32> to vector<1x256xf32>
    %512 = tpu.concatenate %506, %511 in 0 : vector<1x256xf32>, vector<1x256xf32> -> vector<2x256xf32>
    %513 = arith.index_cast %500 : i32 to index
    %c0_148 = arith.constant 0 : index
    %514 = memref.load %arg0[%513, %c0_148] : memref<8x2xi32, #tpu.memory_space<smem>>
    %515 = arith.index_cast %514 : i32 to index
    %c0_149 = arith.constant 0 : index
    %c0_150 = arith.constant 0 : index
    %516 = vector.load %arg1[%515, %c0_149, %c0_150] : memref<50x1x256xf32, #tpu.memory_space<vmem>>, vector<1x1x256xf32>
    %517 = vector.shape_cast %516 : vector<1x1x256xf32> to vector<1x256xf32>
    %518 = arith.index_cast %500 : i32 to index
    %c1_151 = arith.constant 1 : index
    %519 = memref.load %arg0[%518, %c1_151] : memref<8x2xi32, #tpu.memory_space<smem>>
    %520 = arith.index_cast %519 : i32 to index
    %c0_152 = arith.constant 0 : index
    %c0_153 = arith.constant 0 : index
    %521 = vector.load %arg1[%520, %c0_152, %c0_153] : memref<50x1x256xf32, #tpu.memory_space<vmem>>, vector<1x1x256xf32>
    %522 = vector.shape_cast %521 : vector<1x1x256xf32> to vector<1x256xf32>
    %523 = tpu.concatenate %517, %522 in 0 : vector<1x256xf32>, vector<1x256xf32> -> vector<2x256xf32>
    %524 = vector.extract_strided_slice %501 {offsets = [0, 0], sizes = [2, 128], strides = [1, 1]} : vector<2x256xf32> to vector<2x128xf32>
    %525 = vector.extract_strided_slice %512 {offsets = [0, 0], sizes = [2, 128], strides = [1, 1]} : vector<2x256xf32> to vector<2x128xf32>
    %526 = arith.addf %524, %525 : vector<2x128xf32>
    %527 = vector.extract_strided_slice %526 {offsets = [0, 0], sizes = [2, 96], strides = [1, 1]} : vector<2x128xf32> to vector<2x96xf32>
    %528 = arith.negf %527 : vector<2x96xf32>
    %529 = math.exp %528 : vector<2x96xf32>
    %cst_154 = arith.constant 1.000000e+00 : f32
    %530 = vector.broadcast %cst_154 : f32 to vector<2x96xf32>
    %531 = arith.addf %530, %529 : vector<2x96xf32>
    %532 = arith.divf %530, %531 : vector<2x96xf32>
    %533 = vector.extract_strided_slice %526 {offsets = [0, 96], sizes = [2, 32], strides = [1, 1]} : vector<2x128xf32> to vector<2x32xf32>
    %534 = math.tanh %533 : vector<2x32xf32>
    %535 = vector.extract_strided_slice %532 {offsets = [0, 32], sizes = [2, 32], strides = [1, 1]} : vector<2x96xf32> to vector<2x32xf32>
    %536 = arith.mulf %535, %468 : vector<2x32xf32>
    %537 = vector.extract_strided_slice %532 {offsets = [0, 0], sizes = [2, 32], strides = [1, 1]} : vector<2x96xf32> to vector<2x32xf32>
    %538 = arith.mulf %537, %534 : vector<2x32xf32>
    %539 = arith.addf %536, %538 : vector<2x32xf32>
    %540 = vector.extract_strided_slice %532 {offsets = [0, 64], sizes = [2, 32], strides = [1, 1]} : vector<2x96xf32> to vector<2x32xf32>
    %541 = math.tanh %539 : vector<2x32xf32>
    %542 = arith.mulf %540, %541 : vector<2x32xf32>
    %543 = vector.extract_strided_slice %501 {offsets = [0, 128], sizes = [2, 128], strides = [1, 1]} : vector<2x256xf32> to vector<2x128xf32>
    %544 = vector.extract_strided_slice %523 {offsets = [0, 128], sizes = [2, 128], strides = [1, 1]} : vector<2x256xf32> to vector<2x128xf32>
    %545 = arith.addf %543, %544 : vector<2x128xf32>
    %546 = vector.extract_strided_slice %545 {offsets = [0, 0], sizes = [2, 96], strides = [1, 1]} : vector<2x128xf32> to vector<2x96xf32>
    %547 = arith.negf %546 : vector<2x96xf32>
    %548 = math.exp %547 : vector<2x96xf32>
    %cst_155 = arith.constant 1.000000e+00 : f32
    %549 = vector.broadcast %cst_155 : f32 to vector<2x96xf32>
    %550 = arith.addf %549, %548 : vector<2x96xf32>
    %551 = arith.divf %549, %550 : vector<2x96xf32>
    %552 = vector.extract_strided_slice %545 {offsets = [0, 96], sizes = [2, 32], strides = [1, 1]} : vector<2x128xf32> to vector<2x32xf32>
    %553 = math.tanh %552 : vector<2x32xf32>
    %554 = vector.extract_strided_slice %551 {offsets = [0, 32], sizes = [2, 32], strides = [1, 1]} : vector<2x96xf32> to vector<2x32xf32>
    %555 = arith.mulf %554, %487 : vector<2x32xf32>
    %556 = vector.extract_strided_slice %551 {offsets = [0, 0], sizes = [2, 32], strides = [1, 1]} : vector<2x96xf32> to vector<2x32xf32>
    %557 = arith.mulf %556, %553 : vector<2x32xf32>
    %558 = arith.addf %555, %557 : vector<2x32xf32>
    %559 = vector.extract_strided_slice %551 {offsets = [0, 64], sizes = [2, 32], strides = [1, 1]} : vector<2x96xf32> to vector<2x32xf32>
    %560 = math.tanh %558 : vector<2x32xf32>
    %561 = arith.mulf %559, %560 : vector<2x32xf32>
    %562 = arith.index_cast %c7_i32_139 : i32 to index
    %c0_156 = arith.constant 0 : index
    %c0_157 = arith.constant 0 : index
    %563 = vector.load %arg3[%562, %c0_156, %c0_157] : memref<8x2x64xf32, #tpu.memory_space<vmem>>, vector<1x2x32xf32>
    %564 = vector.shape_cast %563 : vector<1x2x32xf32> to vector<2x32xf32>
    %565 = vector.shape_cast %542 : vector<2x32xf32> to vector<1x2x32xf32>
    tpu.vector_store %arg3[%562, %c0_156, %c0_157], %565 {strides = array<i32>} : memref<8x2x64xf32, #tpu.memory_space<vmem>>, vector<1x2x32xf32>,
    %566 = arith.index_cast %500 : i32 to index
    %c0_158 = arith.constant 0 : index
    %c32_159 = arith.constant 32 : index
    %567 = vector.load %arg3[%566, %c0_158, %c32_159] : memref<8x2x64xf32, #tpu.memory_space<vmem>>, vector<1x2x32xf32>
    %568 = vector.shape_cast %567 : vector<1x2x32xf32> to vector<2x32xf32>
    %569 = vector.shape_cast %561 : vector<2x32xf32> to vector<1x2x32xf32>
    tpu.vector_store %arg3[%566, %c0_158, %c32_159], %569 {strides = array<i32>} : memref<8x2x64xf32, #tpu.memory_space<vmem>>, vector<1x2x32xf32>,
    %570 = tpu.concatenate %542, %561 in 1 : vector<2x32xf32>, vector<2x32xf32> -> vector<2x64xf32>
    %c8_i32 = arith.constant 8 : i32
    return
  }
}

</mosaic_0001>

<bundles_post_ra>
// kernel: tpu_custom_call.1
= control target key start
LH: loop header
LB: loop body
LE: loop exit
PB: predicated region body
PF: predicated region fallthrough
CT: control target
= control target key end

     0   :  { %8 = vsyncpa [#allocation5], 0  ;;  %s2427_s0 = inlined_call_operand.vmem [shape: s32[8,2], index: 0, kind: input, shape index: {}]   ;;  %s2428_s1 = inlined_call_operand.hbm [shape: f32[50,1,256], index: 1, kind: input, shape index: {}]   ;;  %s2429_s2 = inlined_call_operand.hbm [shape: f32[64,256], index: 2, kind: input, shape index: {}]   ;;  %s2430_s3 = inlined_call_operand.hbm [shape: f32[8,2,64], index: 3, kind: output, shape index: {}]  }
   0x1   :  { %9 = vsyncpa [#allocation3], 0 }
   0x2   :  { %10 = vsyncpa [#allocation8], 0 }
   0x3   :  { %11 = vsyncpa [#allocation4], 0  ;;  %s18_s14 = sshll.u32 %s2427_s0, 4  ;;  %s19_s14 = int_to_ptr.vmem [resolvable:$true] %s18_s14 }
   0x4   :  { %s1934_s15 = scalar_lea.vmem %s19_s14, 128  ;;  %p1939_p1 = scmp.lt.s32.totalorder %s19_s14, %s19_s14 }
   0x5   :  { %p1935_p0 = scmp.ne.s32.totalorder %s19_s14, %s1934_s15  ;;  %p1940_p2 = scmp.lt.s32.totalorder %s1934_s15, %s1934_s15 }
   0x7   :  { %p1941_p3 = por %p1940_p2, %p1939_p1 }
   0x9   :  { %p1942_p4 = pnand %p1941_p3, %p1935_p0 }
   0xb   :  { %1945 = shalt.err (!%p1942_p4)
}
   0xc   :  { %s2020_s16 = smov [#allocation2]   ;;  %s2021_s17 = smov [#allocation6]  }
   0xd   :  { %21 = dma.vmem_to_smem %s19_s14, 128, %s2020_s16, [#allocation5]  }
   0xe   :  { %s27_s18 = sshll.u32 %s2021_s17, 4  ;;  %s1946_s21 = scalar_lea.hbm %s2428_s1, 1600  ;;  %s28_s18 = int_to_ptr.vmem [resolvable:$true] %s27_s18 }
   0xf   :  { %p1947_p5 = scmp.ne.s32.totalorder %s2428_s1, %s1946_s21  ;;  %p1950_p6 = scmp.lt.u32.totalorder %s1946_s21, %s2428_s1 }
  0x11   :  { %p1952_p7 = pnand %p1950_p6, %p1947_p5 }
  0x13   :  { %1955 = shalt.err (!%p1952_p7)
}
  0x14   :  { %s1956_s25 = scalar_lea.vmem %s28_s18, 1600  ;;  %p1961_p9 = scmp.lt.s32.totalorder %s28_s18, %s28_s18 }
  0x15   :  { %p1957_p8 = scmp.ne.s32.totalorder %s28_s18, %s1956_s25  ;;  %p1962_p10 = scmp.lt.s32.totalorder %s1956_s25, %s1956_s25 }
  0x17   :  { %p1963_p11 = por %p1962_p10, %p1961_p9 }
  0x19   :  { %p1964_p12 = pnand %p1963_p11, %p1957_p8 }
  0x1b   :  { %1967 = shalt.err (!%p1964_p12)
}
  0x1c   :  { %s2022_s26 = smov 32   ;;  %s2023_s27 = smov 2  }
  0x1d   :  { %33 = dma.hbm_to_vmem [thread:$0]  %s2428_s1, 1600, %s28_s18, [#allocation3], %s2022_s26, %s2022_s26, %s2023_s27  }
  0x1e   :  { %s2024_s30 = smov [#allocation7]   ;;  %s1968_s7 = scalar_lea.hbm %s2429_s2, 2048 }
  0x1f   :  { %s39_s4 = sshll.u32 %s2024_s30, 4  ;;  %p1969_p13 = scmp.ne.s32.totalorder %s2429_s2, %s1968_s7  ;;  %s40_s4 = int_to_ptr.vmem [resolvable:$true] %s39_s4 }
  0x20   :  { %p1972_p0 = scmp.lt.u32.totalorder %s1968_s7, %s2429_s2 }
  0x22   :  { %p1974_p1 = pnand %p1972_p0, %p1969_p13 }
  0x24   :  { %1977 = shalt.err (!%p1974_p1)
}
  0x25   :  { %s1978_s12 = scalar_lea.vmem %s40_s4, 2048  ;;  %p1983_p3 = scmp.lt.s32.totalorder %s40_s4, %s40_s4 }
  0x26   :  { %p1979_p2 = scmp.ne.s32.totalorder %s40_s4, %s1978_s12  ;;  %p1984_p4 = scmp.lt.s32.totalorder %s1978_s12, %s1978_s12 }
  0x28   :  { %p1985_p5 = por %p1984_p4, %p1983_p3 }
  0x2a   :  { %p1986_p6 = pnand %p1985_p5, %p1979_p2 }
  0x2c   :  { %1989 = shalt.err (!%p1986_p6)
}
  0x2d   :  { %s2025_s1 = smov 256   ;;  %s2026_s13 = smov 16  }
  0x2e   :  { %45 = dma.hbm_to_vmem [thread:$0]  %s2429_s2, 2048, %s40_s4, [#allocation8], %s2025_s1, %s2025_s1, %s2026_s13  }
  0x2f   :  { %2012 = dma.done.wait [#allocation5], 128  }
  0x30   :  { %2013 = vsyncadd [#allocation5], 4294967168 }
  0x31   :  { %2014 = dma.done.wait [#allocation3], 1600  }
  0x32   :  { %2015 = vsyncadd [#allocation3], 4294965696 }
  0x33   :  { %2016 = dma.done.wait [#allocation8], 2048  }
  0x34   :  { %2017 = vsyncadd [#allocation8], 4294965248 }
  0x35   :  { %55 = sfence }
  0x36   :  { %v57_v0 = vld [vmem:[#allocation7 + $0x8] sm:$0xff]  ;;  %v59_v1 = vld [vmem:[#allocation7 + $0x18] sm:$0xff]  ;;  %v56_v2 = vld [vmem:[#allocation7] sm:$0xff]  ;;  %v2027_v7 = vmov 0.0   ;;  %s147_s2 = sld [smem:[#allocation2]]  ;;  %s1583_s16 = sld [smem:[#allocation2 + $0x1]]  ;;  %v156_v25 = vlaneseq }
  0x37   :  { %v2081_v3 = vpack.c.bf16 %v59_v1, %v57_v0  ;;  %v58_v4 = vld [vmem:[#allocation7 + $0x10] sm:$0xff]  ;;  %v61_v5 = vld [vmem:[#allocation7 + $0x28] sm:$0xff]  ;;  %v63_v6 = vld [vmem:[#allocation7 + $0x38] sm:$0xff]  ;;  %140 = vmatprep.mubr.f32.mxu0 %v2027_v7  ;;  %322 = vmatprep.mubr.f32.mxu1 %v2027_v7  ;;  %s1585_s17 = sld [smem:[#allocation2 + $0x380]]  ;;  %s1587_s18 = sld [smem:[#allocation2 + $0x381]]  ;;  %vm167_vm0 = vcmask 1040384  }
  0x38   :  { %v2085_v8 = vpack.c.bf16 %v58_v4, %v56_v2  ;;  %v2087_v9 = vpack.c.bf16 %v63_v6, %v61_v5  ;;  %v60_v10 = vld [vmem:[#allocation7 + $0x20] sm:$0xff]  ;;  %v62_v11 = vld [vmem:[#allocation7 + $0x30] sm:$0xff]  ;;  %v65_v12 = vld [vmem:[#allocation7 + $0x48] sm:$0xff]  ;;  %v157_v26 = vshrl.u32 %v156_v25, 7  ;;  %s2028_s28 = smov 64   ;;  %s2029_s29 = smov 96  }
  0x39   :  { %1668 = vmatprep.subr.bf16.mxu0 %v2081_v3  ;;  %v67_v13 = vld [vmem:[#allocation7 + $0x58] sm:$0xff]  ;;  %1684 = vmatprep.subr.bf16.mxu1 %v2081_v3  ;;  %v2092_v14 = vpack.c.bf16 %v62_v11, %v60_v10  ;;  %v64_v16 = vld [vmem:[#allocation7 + $0x40] sm:$0xff]  ;;  %v66_v17 = vld [vmem:[#allocation7 + $0x50] sm:$0xff]  ;;  %vm244_vm1 = vcmask 254976   ;;  %vm251_vm2 = vcmask 517376   ;;  %vm253_vm3 = vcmask 261120  }
  0x3a   :  { %1670 = vmatpush1.bf16.msra.mxu0 %v2085_v8  ;;  %1686 = vmatpush1.bf16.msra.mxu1 %v2085_v8  ;;  %v2096_v15 = vpack.c.bf16 %v67_v13, %v65_v12  ;;  %v69_v18 = vld [vmem:[#allocation7 + $0x68] sm:$0xff]  ;;  %v71_v19 = vld [vmem:[#allocation7 + $0x78] sm:$0xff]  ;;  %v2100_v20 = vpack.c.bf16 %v66_v17, %v64_v16  ;;  %v68_v22 = vld [vmem:[#allocation7 + $0x60] sm:$0xff]  ;;  %v2127_v27 = vsub.s32 0, %v157_v26  ;;  %v2129_v30 = vsub.s32 1, %v157_v26  ;;  %s1592_s30 = sld [smem:[#allocation2 + $0x80]] }
  0x3b   :  { %1672 = vmatprep.subr.bf16.mxu0 %v2087_v9  ;;  %1688 = vmatprep.subr.bf16.mxu1 %v2087_v9  ;;  %v2104_v21 = vpack.c.bf16 %v71_v19, %v69_v18  ;;  %v70_v23 = vld [vmem:[#allocation7 + $0x70] sm:$0xff]  ;;  %vm72_vm4 = vcmask 523264   ;;  %s1594_s4 = sld [smem:[#allocation2 + $0x81]]  ;;  %s1596_s5 = sld [smem:[#allocation2 + $0x300]] }
  0x3c   :  { %v2108_v24 = vpack.c.bf16 %v70_v23, %v68_v22  ;;  %s1582_s19 = sshll.u32 %s147_s2, 1  ;;  %s1584_s20 = sshll.u32 %s1583_s16, 1 }
  0x3d   :  { %s1586_s21 = sshll.u32 %s1585_s17, 1  ;;  %s1588_s22 = sshll.u32 %s1587_s18, 1 }
  0x3e   :  { %1674 = vmatpush1.bf16.msra.mxu0 %v2092_v14  ;;  %1690 = vmatpush1.bf16.msra.mxu1 %v2092_v14  ;;  %s149_s23 = scalar_lea.vmem [#allocation6], %s1582_s19  ;;  %s153_s0 = scalar_lea.vmem [#allocation6], %s1584_s20 }
  0x3f   :  { %1676 = vmatprep.subr.bf16.mxu0 %v2096_v15  ;;  %1692 = vmatprep.subr.bf16.mxu1 %v2096_v15  ;;  %v150_v28 = vld [vmem:[%s149_s23] sm:$0x3]  ;;  %s171_s24 = scalar_lea.vmem [#allocation6], %s1586_s21  ;;  %s175_s25 = scalar_lea.vmem [#allocation6], %s1588_s22 }
  0x40   :  { %v154_v29 = vld [vmem:[%s153_s0] sm:$0x3]  ;;  %v159_v33 = vrot.slane %v150_v28, %v2127_v27  ;;  %s1598_s6 = sld [smem:[#allocation2 + $0x301]]  ;;  %s1593_s7 = sshll.u32 %s1592_s30, 1 }
  0x41   :  { %v172_v31 = vld [vmem:[%s171_s24] sm:$0x3]  ;;  %v165_v34 = vrot.slane %v154_v29, %v2127_v27  ;;  %s1595_s8 = sshll.u32 %s1594_s4, 1  ;;  %s1597_s9 = sshll.u32 %s1596_s5, 1 }
  0x42   :  { %1678 = vmatpush1.bf16.msra.mxu0 %v2100_v20  ;;  %1694 = vmatpush1.bf16.msra.mxu1 %v2100_v20  ;;  %v176_v32 = vld [vmem:[%s175_s25] sm:$0x3]  ;;  %v181_v35 = vrot.slane %v172_v31, %v2129_v30  ;;  %s2164_s11 = scalar_lea.vmem [#allocation6], %s1593_s7  ;;  %s2167_s12 = scalar_lea.vmem [#allocation6], %s1595_s8 }
  0x43   :  { %1680 = vmatprep.subr.bf16.mxu0 %v2104_v21  ;;  %1696 = vmatprep.subr.bf16.mxu1 %v2104_v21  ;;  %v187_v36 = vrot.slane %v176_v32, %v2129_v30  ;;  %v168_v37 = vsel %vm167_vm0, %v159_v33, %v165_v34  ;;  %v332_v12 = vld [vmem:[%s2164_s11] sm:$0x3]  ;;  %s2170_s1 = scalar_lea.vmem [#allocation6], %s1597_s9  ;;  %s1603_s14 = sld [smem:[#allocation2 + $0x100]] }
  0x44   :  { %v336_v13 = vld [vmem:[%s2167_s12] sm:$0x3]  ;;  %v341_v18 = vrot.slane %v332_v12, %v2127_v27  ;;  %s1605_s15 = sld [smem:[#allocation2 + $0x101]]  ;;  %s1607_s2 = sld [smem:[#allocation2 + $0x280]] }
  0x45   :  { %v189_v39 = vsel %vm167_vm0, %v181_v35, %v187_v36  ;;  %v353_v16 = vld [vmem:[%s2170_s1] sm:$0x3]  ;;  %v347_v19 = vrot.slane %v336_v13, %v2127_v27  ;;  %s1609_s16 = sld [smem:[#allocation2 + $0x281]]  ;;  %s1614_s24 = sld [smem:[#allocation2 + $0x180]] }
  0x46   :  { %1682 = vmatpush1.bf16.msra.mxu0 %v2108_v24  ;;  %1698 = vmatpush1.bf16.msra.mxu1 %v2108_v24  ;;  %s1599_s10 = sshll.u32 %s1598_s6, 1  ;;  %v362_v22 = vrot.slane %v353_v16, %v2129_v30  ;;  %s1616_s25 = sld [smem:[#allocation2 + $0x181]] }
  0x47   :  { %1700 = vmatprep.subr.bf16.mxu0 %v2081_v3  ;;  %1716 = vmatprep.subr.bf16.mxu1 %v2081_v3  ;;  %s2173_s13 = scalar_lea.vmem [#allocation6], %s1599_s10  ;;  %v349_v25 = vsel %vm167_vm0, %v341_v18, %v347_v19  ;;  %s1618_s30 = sld [smem:[#allocation2 + $0x200]] }
  0x48   :  { %v357_v17 = vld [vmem:[%s2173_s13] sm:$0x3]  ;;  %s1620_s4 = sld [smem:[#allocation2 + $0x201]] }
  0x49   :  { %141 = vmatmul.mubr.f32.vlgmr.msra.gmra.mrb[0].mxu0 %v2027_v7  ;;  %v368_v23 = vrot.slane %v357_v17, %v2129_v30  ;;  %s1604_s17 = sshll.u32 %s1603_s14, 1 }
  0x4a   :  { %1702 = vmatpush1.bf16.msra.mxu0 %v2085_v8  ;;  %501 = vmatprep.mubr.f32.mxu0 %v2027_v7  ;;  %s1606_s18 = sshll.u32 %s1605_s15, 1  ;;  %s1608_s19 = sshll.u32 %s1607_s2, 1 }
  0x4b   :  { %1704 = vmatprep.subr.bf16.mxu0 %v2087_v9  ;;  %v370_v26 = vsel %vm167_vm0, %v362_v22, %v368_v23  ;;  %s1610_s20 = sshll.u32 %s1609_s16, 1  ;;  %s2211_s21 = scalar_lea.vmem [#allocation6], %s1604_s17 }
  0x4c   :  { %s2214_s22 = scalar_lea.vmem [#allocation6], %s1606_s18  ;;  %s2217_s23 = scalar_lea.vmem [#allocation6], %s1608_s19 }
  0x4d   :  { %s2220_s0 = scalar_lea.vmem [#allocation6], %s1610_s20  ;;  %s1615_s5 = sshll.u32 %s1614_s24, 1 }
  0x4e   :  { %1706 = vmatpush1.bf16.msra.mxu0 %v2092_v14  ;;  %s1617_s6 = sshll.u32 %s1616_s25, 1  ;;  %s1619_s7 = sshll.u32 %s1618_s30, 1 }
  0x4f   :  { %1708 = vmatprep.subr.bf16.mxu0 %v2096_v15  ;;  %s1621_s8 = sshll.u32 %s1620_s4, 1  ;;  %s2258_s9 = scalar_lea.vmem [#allocation6], %s1615_s5 }
  0x50   :  { %s2261_s10 = scalar_lea.vmem [#allocation6], %s1617_s6  ;;  %s2264_s14 = scalar_lea.vmem [#allocation6], %s1619_s7 }
  0x51   :  { %s2267_s15 = scalar_lea.vmem [#allocation6], %s1621_s8 }
  0x52   :  { %1710 = vmatpush1.bf16.msra.mxu0 %v2100_v20 }
  0x53   :  { %1712 = vmatprep.subr.bf16.mxu0 %v2104_v21 }
  0x56   :  { %1714 = vmatpush1.bf16.msra.mxu0 %v2108_v24 }
  0x57   :  { %1732 = vmatprep.subr.bf16.mxu0 %v2081_v3 }
 0x11c   :  { %v142_v38 = vpop.f32.mrb[0].mxu0 }
 0x11d   :  { %v190_v40 = vadd.f32 %v168_v37, %v142_v38  ;;  %v144_v41 = vpop.f32.mrb[1].mxu0 }
 0x11e   :  { %v215_v42 = vadd.f32 %v189_v39, %v144_v41 }
 0x11f   :  { %1806 = vtanh.f32 %v190_v40  ;;  %v1589_v45 = vmul.f32 -1.442695, %v190_v40 }
 0x120   :  { %1808 = vtanh.f32 %v215_v42  ;;  %v1590_v46 = vmul.f32 -1.442695, %v215_v42 }
 0x121   :  { %1810 = vpow2.f32 %v1589_v45 }
 0x122   :  { %1812 = vpow2.f32 %v1590_v46 }
 0x129   :  { %v1807_v43 = vpop.eup %1806 }
 0x12a   :  { %200 = vrot.lane.b32.xlu0 %v1807_v43, %s2022_s26  ;;  %v1809_v44 = vpop.eup %1808 }
 0x12b   :  { %v1811_v47 = vpop.eup %1810 }
 0x12c   :  { %v194_v48 = vadd.f32 1.0, %v1811_v47  ;;  %v1813_v49 = vpop.eup %1812 }
 0x12d   :  { %v219_v50 = vadd.f32 1.0, %v1813_v49 }
 0x12e   :  { %225 = vrot.lane.b32.xlu0 %v1809_v44, %s2022_s26  ;;  %1814 = vrcp.f32 %v194_v48 }
 0x12f   :  { %1816 = vrcp.f32 %v219_v50 }
 0x138   :  { %v1815_v51 = vpop.eup %1814 }
 0x139   :  { %v1817_v54 = vpop.eup %1816  ;;  %v198_v57 = vmul.f32 0.0, %v1815_v51 }
 0x13a   :  { %v223_v60 = vmul.f32 0.0, %v1817_v54 }
 0x19c   :  { %v201_v52 = vpop.permute.xlu0 %200 }
 0x19d   :  { %v203_v53 = vmul.f32 %v1815_v51, %v201_v52 }
 0x19f   :  { %205 = vrot.lane.b32.xlu1 %v203_v53, %s2022_s26 }
 0x1a0   :  { %v226_v55 = vpop.permute.xlu0 %225 }
 0x1a1   :  { %v228_v56 = vmul.f32 %v1817_v54, %v226_v55 }
 0x1a3   :  { %230 = vrot.lane.b32.xlu1 %v228_v56, %s2022_s26 }
 0x211   :  { %v206_v58 = vpop.permute.xlu1 %205 }
 0x212   :  { %v2141_v59 = vadd.f32 %v206_v58, %v198_v57 }
 0x214   :  { %1818 = vtanh.f32 %v2141_v59 }
 0x215   :  { %v231_v61 = vpop.permute.xlu1 %230 }
 0x216   :  { %v2144_v62 = vadd.f32 %v231_v61, %v223_v60 }
 0x218   :  { %1820 = vtanh.f32 %v2144_v62 }
 0x21e   :  { %v1819_v63 = vpop.eup %1818 }
 0x21f   :  { %211 = vrot.lane.b32.xlu0 %v1819_v63, %s2022_s26  ;;  %v515_v63 = vld [vmem:[%s2214_s22] sm:$0x3] }
 0x222   :  { %v1821_v0 = vpop.eup %1820 }
 0x223   :  { %236 = vrot.lane.b32.xlu1 %v1821_v0, %s2022_s26  ;;  %v532_v0 = vld [vmem:[%s2217_s23] sm:$0x3] }
 0x291   :  { %v212_v1 = vpop.permute.xlu0 %211 }
 0x292   :  { %v214_v2 = vmul.f32 %v1815_v51, %v212_v1  ;;  %v536_v1 = vld [vmem:[%s2220_s0] sm:$0x3] }
 0x294   :  { %241 = vrot.lane.b32.xlu0 %v214_v2, %s2028_s28 }
 0x295   :  { %v237_v4 = vpop.permute.xlu1 %236 }
 0x296   :  { %v239_v5 = vmul.f32 %v1817_v54, %v237_v4  ;;  %v526_v4 = vrot.slane %v515_v63, %v2127_v27 }
 0x298   :  { %247 = vrot.lane.b32.xlu1 %v239_v5, %s2029_s29  ;;  %v541_v5 = vrot.slane %v532_v0, %v2129_v30 }
 0x306   :  { %v242_v6 = vpop.permute.xlu0 %241 }
 0x307   :  { %245 = vst.msk [vmem:[#allocation9] sm:$0x3] %vm244_vm1, %v242_v6 }
 0x30a   :  { %v248_v10 = vpop.permute.xlu1 %247 }
 0x30b   :  { %252 = vst.msk [vmem:[#allocation9 + $0xe] sm:$0x3] %vm251_vm2, %v248_v10  ;;  %v254_v11 = vsel %vm253_vm3, %v242_v6, %v248_v10  ;;  %v547_v6 = vrot.slane %v536_v1, %v2129_v30 }
 0x30c   :  { %1591 = vmatmul.mubr.msk.f32.vlgmr.msra.gmra.mrb[0].mxu1 %vm72_vm4, %v254_v11 }
 0x30d   :  { %1718 = vmatpush1.bf16.msra.mxu1 %v2085_v8  ;;  %680 = vmatprep.mubr.f32.mxu1 %v2027_v7  ;;  %v549_v11 = vsel %vm167_vm0, %v541_v5, %v547_v6 }
 0x30e   :  { %1720 = vmatprep.subr.bf16.mxu1 %v2087_v9 }
 0x311   :  { %1722 = vmatpush1.bf16.msra.mxu1 %v2092_v14 }
 0x312   :  { %1724 = vmatprep.subr.bf16.mxu1 %v2096_v15 }
 0x315   :  { %1726 = vmatpush1.bf16.msra.mxu1 %v2100_v20 }
 0x316   :  { %1728 = vmatprep.subr.bf16.mxu1 %v2104_v21 }
 0x319   :  { %1730 = vmatpush1.bf16.msra.mxu1 %v2108_v24 }
 0x31a   :  { %1748 = vmatprep.subr.bf16.mxu1 %v2081_v3 }
 0x3df   :  { %v324_v28 = vpop.f32.mrb[0].mxu1 }
 0x3e0   :  { %v371_v29 = vadd.f32 %v349_v25, %v324_v28  ;;  %v326_v31 = vpop.f32.mrb[1].mxu1 }
 0x3e1   :  { %v396_v32 = vadd.f32 %v370_v26, %v326_v31 }
 0x3e2   :  { %1822 = vtanh.f32 %v371_v29  ;;  %v1600_v35 = vmul.f32 -1.442695, %v371_v29 }
 0x3e3   :  { %1824 = vtanh.f32 %v396_v32  ;;  %v1601_v36 = vmul.f32 -1.442695, %v396_v32 }
 0x3e4   :  { %1826 = vpow2.f32 %v1600_v35 }
 0x3e5   :  { %1828 = vpow2.f32 %v1601_v36 }
 0x3ec   :  { %v1823_v33 = vpop.eup %1822 }
 0x3ed   :  { %v1825_v34 = vpop.eup %1824  ;;  %381 = vrot.lane.b32.xlu0 %v1823_v33, %s2022_s26 }
 0x3ee   :  { %406 = vrot.lane.b32.xlu1 %v1825_v34, %s2022_s26  ;;  %v1827_v37 = vpop.eup %1826 }
 0x3ef   :  { %v1829_v38 = vpop.eup %1828  ;;  %v375_v39 = vadd.f32 1.0, %v1827_v37 }
 0x3f0   :  { %v400_v40 = vadd.f32 1.0, %v1829_v38 }
 0x3f1   :  { %1830 = vrcp.f32 %v375_v39 }
 0x3f2   :  { %1832 = vrcp.f32 %v400_v40 }
 0x3fb   :  { %v1831_v41 = vpop.eup %1830 }
 0x3fc   :  { %v1833_v43 = vpop.eup %1832  ;;  %v379_v47 = vmul.f32 %v1831_v41, %v2141_v59 }
 0x3fd   :  { %v404_v49 = vmul.f32 %v1833_v43, %v2144_v62  ;;  %v511_v62 = vld [vmem:[%s2211_s21] sm:$0x3] }
 0x3fe   :  { %v520_v2 = vrot.slane %v511_v62, %v2127_v27 }
 0x400   :  { %v528_v10 = vsel %vm167_vm0, %v520_v2, %v526_v4 }
 0x45f   :  { %v382_v42 = vpop.permute.xlu0 %381 }
 0x460   :  { %v384_v44 = vmul.f32 %v1831_v41, %v382_v42  ;;  %v407_v45 = vpop.permute.xlu1 %406 }
 0x461   :  { %v409_v46 = vmul.f32 %v1833_v43, %v407_v45 }
 0x462   :  { %386 = vrot.lane.b32.xlu0 %v384_v44, %s2022_s26 }
 0x463   :  { %411 = vrot.lane.b32.xlu1 %v409_v46, %s2022_s26 }
 0x4d4   :  { %v387_v48 = vpop.permute.xlu0 %386 }
 0x4d5   :  { %v2188_v50 = vadd.f32 %v387_v48, %v379_v47  ;;  %v412_v51 = vpop.permute.xlu1 %411 }
 0x4d6   :  { %v2190_v52 = vadd.f32 %v412_v51, %v404_v49 }
 0x4d7   :  { %1834 = vtanh.f32 %v2188_v50 }
 0x4d8   :  { %1836 = vtanh.f32 %v2190_v52 }
 0x4e1   :  { %v1835_v53 = vpop.eup %1834 }
 0x4e2   :  { %v1837_v54 = vpop.eup %1836  ;;  %392 = vrot.lane.b32.xlu0 %v1835_v53, %s2022_s26  ;;  %v694_v53 = vld [vmem:[%s2261_s10] sm:$0x3] }
 0x4e3   :  { %417 = vrot.lane.b32.xlu1 %v1837_v54, %s2022_s26  ;;  %v715_v54 = vld [vmem:[%s2267_s15] sm:$0x3] }
 0x554   :  { %v393_v55 = vpop.permute.xlu0 %392 }
 0x555   :  { %v395_v56 = vmul.f32 %v1831_v41, %v393_v55  ;;  %v418_v57 = vpop.permute.xlu1 %417 }
 0x556   :  { %v420_v58 = vmul.f32 %v1833_v43, %v418_v57 }
 0x557   :  { %422 = vrot.lane.b32.xlu0 %v395_v56, %s2028_s28  ;;  %v705_v56 = vrot.slane %v694_v53, %v2127_v27 }
 0x558   :  { %428 = vrot.lane.b32.xlu1 %v420_v58, %s2029_s29  ;;  %v726_v58 = vrot.slane %v715_v54, %v2129_v30 }
 0x5c9   :  { %v423_v59 = vpop.permute.xlu0 %422 }
 0x5ca   :  { %426 = vst.msk [vmem:[#allocation9 + $0x2] sm:$0x3] %vm244_vm1, %v423_v59  ;;  %v429_v60 = vpop.permute.xlu1 %428 }
 0x5cb   :  { %432 = vst.msk [vmem:[#allocation9 + $0xc] sm:$0x3] %vm251_vm2, %v429_v60  ;;  %v433_v61 = vsel %vm253_vm3, %v423_v59, %v429_v60 }
 0x5cc   :  { %1602 = vmatmul.mubr.msk.f32.vlgmr.msra.gmra.mrb[2].mxu0 %vm72_vm4, %v433_v61 }
 0x5cd   :  { %1734 = vmatpush1.bf16.msra.mxu0 %v2085_v8  ;;  %859 = vmatprep.mubr.f32.mxu0 %v2027_v7 }
 0x5ce   :  { %1736 = vmatprep.subr.bf16.mxu0 %v2087_v9 }
 0x5d1   :  { %1738 = vmatpush1.bf16.msra.mxu0 %v2092_v14 }
 0x5d2   :  { %1740 = vmatprep.subr.bf16.mxu0 %v2096_v15 }
 0x5d5   :  { %1742 = vmatpush1.bf16.msra.mxu0 %v2100_v20 }
 0x5d6   :  { %1744 = vmatprep.subr.bf16.mxu0 %v2104_v21 }
 0x5d9   :  { %1746 = vmatpush1.bf16.msra.mxu0 %v2108_v24 }
 0x5da   :  { %1764 = vmatprep.subr.bf16.mxu0 %v2081_v3 }
 0x69f   :  { %v503_v12 = vpop.f32.mrb[2].mxu0 }
 0x6a0   :  { %v550_v13 = vadd.f32 %v528_v10, %v503_v12  ;;  %v505_v16 = vpop.f32.mrb[3].mxu0 }
 0x6a1   :  { %v575_v17 = vadd.f32 %v549_v11, %v505_v16 }
 0x6a2   :  { %1838 = vtanh.f32 %v550_v13  ;;  %v1611_v22 = vmul.f32 -1.442695, %v550_v13 }
 0x6a3   :  { %1840 = vtanh.f32 %v575_v17  ;;  %v1612_v23 = vmul.f32 -1.442695, %v575_v17 }
 0x6a4   :  { %1842 = vpow2.f32 %v1611_v22 }
 0x6a5   :  { %1844 = vpow2.f32 %v1612_v23 }
 0x6ac   :  { %v1839_v18 = vpop.eup %1838 }
 0x6ad   :  { %v1841_v19 = vpop.eup %1840  ;;  %560 = vrot.lane.b32.xlu0 %v1839_v18, %s2022_s26 }
 0x6ae   :  { %585 = vrot.lane.b32.xlu1 %v1841_v19, %s2022_s26  ;;  %v1843_v25 = vpop.eup %1842 }
 0x6af   :  { %v1845_v26 = vpop.eup %1844  ;;  %v554_v28 = vadd.f32 1.0, %v1843_v25 }
 0x6b0   :  { %v579_v29 = vadd.f32 1.0, %v1845_v26 }
 0x6b1   :  { %1846 = vrcp.f32 %v554_v28 }
 0x6b2   :  { %1848 = vrcp.f32 %v579_v29 }
 0x6bb   :  { %v1847_v31 = vpop.eup %1846 }
 0x6bc   :  { %v1849_v33 = vpop.eup %1848  ;;  %v558_v37 = vmul.f32 %v1847_v31, %v2188_v50 }
 0x6bd   :  { %v583_v39 = vmul.f32 %v1849_v33, %v2190_v52  ;;  %v690_v52 = vld [vmem:[%s2258_s9] sm:$0x3] }
 0x6be   :  { %v699_v55 = vrot.slane %v690_v52, %v2127_v27 }
 0x6c0   :  { %v707_v59 = vsel %vm167_vm0, %v699_v55, %v705_v56 }
 0x71f   :  { %v561_v32 = vpop.permute.xlu0 %560 }
 0x720   :  { %v563_v34 = vmul.f32 %v1847_v31, %v561_v32  ;;  %v586_v35 = vpop.permute.xlu1 %585 }
 0x721   :  { %v588_v36 = vmul.f32 %v1849_v33, %v586_v35 }
 0x722   :  { %565 = vrot.lane.b32.xlu0 %v563_v34, %s2022_s26 }
 0x723   :  { %590 = vrot.lane.b32.xlu1 %v588_v36, %s2022_s26 }
 0x794   :  { %v566_v38 = vpop.permute.xlu0 %565 }
 0x795   :  { %v2235_v40 = vadd.f32 %v566_v38, %v558_v37  ;;  %v591_v41 = vpop.permute.xlu1 %590 }
 0x796   :  { %v2237_v42 = vadd.f32 %v591_v41, %v583_v39  ;;  %v869_v41 = vld [vmem:[%s2264_s14] sm:$0x3] }
 0x797   :  { %1850 = vtanh.f32 %v2235_v40 }
 0x798   :  { %1852 = vtanh.f32 %v2237_v42 }
 0x7a1   :  { %v1851_v43 = vpop.eup %1850 }
 0x7a2   :  { %v1853_v44 = vpop.eup %1852  ;;  %571 = vrot.lane.b32.xlu0 %v1851_v43, %s2022_s26  ;;  %v890_v43 = vld [vmem:[%s2258_s9] sm:$0x3] }
 0x7a3   :  { %596 = vrot.lane.b32.xlu1 %v1853_v44, %s2022_s26  ;;  %v894_v44 = vld [vmem:[%s2261_s10] sm:$0x3] }
 0x814   :  { %v572_v45 = vpop.permute.xlu0 %571 }
 0x815   :  { %v574_v46 = vmul.f32 %v1847_v31, %v572_v45  ;;  %v597_v47 = vpop.permute.xlu1 %596  ;;  %v878_v45 = vrot.slane %v869_v41, %v2127_v27 }
 0x816   :  { %v599_v48 = vmul.f32 %v1849_v33, %v597_v47  ;;  %v899_v47 = vrot.slane %v890_v43, %v2129_v30 }
 0x817   :  { %601 = vrot.lane.b32.xlu0 %v574_v46, %s2028_s28 }
 0x818   :  { %607 = vrot.lane.b32.xlu1 %v599_v48, %s2029_s29  ;;  %v905_v48 = vrot.slane %v894_v44, %v2129_v30 }
 0x889   :  { %v602_v49 = vpop.permute.xlu0 %601 }
 0x88a   :  { %605 = vst.msk [vmem:[#allocation9 + $0x4] sm:$0x3] %vm244_vm1, %v602_v49  ;;  %v608_v50 = vpop.permute.xlu1 %607 }
 0x88b   :  { %611 = vst.msk [vmem:[#allocation9 + $0xa] sm:$0x3] %vm251_vm2, %v608_v50  ;;  %v612_v51 = vsel %vm253_vm3, %v602_v49, %v608_v50  ;;  %v907_v50 = vsel %vm167_vm0, %v899_v47, %v905_v48 }
 0x88c   :  { %1613 = vmatmul.mubr.msk.f32.vlgmr.msra.gmra.mrb[2].mxu1 %vm72_vm4, %v612_v51 }
 0x88d   :  { %1750 = vmatpush1.bf16.msra.mxu1 %v2085_v8  ;;  %1036 = vmatprep.mubr.f32.mxu1 %v2027_v7 }
 0x88e   :  { %1752 = vmatprep.subr.bf16.mxu1 %v2087_v9 }
 0x891   :  { %1754 = vmatpush1.bf16.msra.mxu1 %v2092_v14 }
 0x892   :  { %1756 = vmatprep.subr.bf16.mxu1 %v2096_v15 }
 0x895   :  { %1758 = vmatpush1.bf16.msra.mxu1 %v2100_v20 }
 0x896   :  { %1760 = vmatprep.subr.bf16.mxu1 %v2104_v21 }
 0x899   :  { %1762 = vmatpush1.bf16.msra.mxu1 %v2108_v24 }
 0x89a   :  { %1780 = vmatprep.subr.bf16.mxu1 %v2081_v3  ;;  %v711_v3 = vld [vmem:[%s2264_s14] sm:$0x3] }
 0x89b   :  { %v720_v57 = vrot.slane %v711_v3, %v2129_v30 }
 0x89d   :  { %v728_v60 = vsel %vm167_vm0, %v720_v57, %v726_v58 }
 0x95f   :  { %v682_v61 = vpop.f32.mrb[2].mxu1 }
 0x960   :  { %v729_v62 = vadd.f32 %v707_v59, %v682_v61  ;;  %v684_v63 = vpop.f32.mrb[3].mxu1 }
 0x961   :  { %v754_v0 = vadd.f32 %v728_v60, %v684_v63 }
 0x962   :  { %1854 = vtanh.f32 %v729_v62  ;;  %v1622_v4 = vmul.f32 -1.442695, %v729_v62 }
 0x963   :  { %1856 = vtanh.f32 %v754_v0  ;;  %v1623_v5 = vmul.f32 -1.442695, %v754_v0 }
 0x964   :  { %1858 = vpow2.f32 %v1622_v4 }
 0x965   :  { %1860 = vpow2.f32 %v1623_v5 }
 0x96c   :  { %v1855_v1 = vpop.eup %1854 }
 0x96d   :  { %v1857_v2 = vpop.eup %1856  ;;  %739 = vrot.lane.b32.xlu0 %v1855_v1, %s2022_s26 }
 0x96e   :  { %764 = vrot.lane.b32.xlu1 %v1857_v2, %s2022_s26  ;;  %v1859_v6 = vpop.eup %1858 }
 0x96f   :  { %v1861_v10 = vpop.eup %1860  ;;  %v733_v11 = vadd.f32 1.0, %v1859_v6 }
 0x970   :  { %v758_v12 = vadd.f32 1.0, %v1861_v10 }
 0x971   :  { %1862 = vrcp.f32 %v733_v11 }
 0x972   :  { %1864 = vrcp.f32 %v758_v12 }
 0x97b   :  { %v1863_v13 = vpop.eup %1862 }
 0x97c   :  { %v1865_v17 = vpop.eup %1864  ;;  %v737_v23 = vmul.f32 %v1863_v13, %v2235_v40 }
 0x97d   :  { %v762_v26 = vmul.f32 %v1865_v17, %v2237_v42  ;;  %v873_v42 = vld [vmem:[%s2267_s15] sm:$0x3] }
 0x97e   :  { %v884_v46 = vrot.slane %v873_v42, %v2127_v27 }
 0x980   :  { %v886_v49 = vsel %vm167_vm0, %v878_v45, %v884_v46 }
 0x9df   :  { %v740_v16 = vpop.permute.xlu0 %739 }
 0x9e0   :  { %v742_v18 = vmul.f32 %v1863_v13, %v740_v16  ;;  %v765_v19 = vpop.permute.xlu1 %764 }
 0x9e1   :  { %v767_v22 = vmul.f32 %v1865_v17, %v765_v19 }
 0x9e2   :  { %744 = vrot.lane.b32.xlu0 %v742_v18, %s2022_s26 }
 0x9e3   :  { %769 = vrot.lane.b32.xlu1 %v767_v22, %s2022_s26 }
 0xa54   :  { %v745_v25 = vpop.permute.xlu0 %744 }
 0xa55   :  { %v2282_v28 = vadd.f32 %v745_v25, %v737_v23  ;;  %v770_v29 = vpop.permute.xlu1 %769 }
 0xa56   :  { %v2284_v31 = vadd.f32 %v770_v29, %v762_v26  ;;  %v1046_v29 = vld [vmem:[%s2217_s23] sm:$0x3]  ;;  %s2030_s23 = smov [#allocation9]  }
 0xa57   :  { %1866 = vtanh.f32 %v2282_v28 }
 0xa58   :  { %1868 = vtanh.f32 %v2284_v31 }
 0xa61   :  { %v1867_v32 = vpop.eup %1866 }
 0xa62   :  { %v1869_v33 = vpop.eup %1868  ;;  %750 = vrot.lane.b32.xlu0 %v1867_v32, %s2022_s26  ;;  %v1067_v32 = vld [vmem:[%s2211_s21] sm:$0x3] }
 0xa63   :  { %775 = vrot.lane.b32.xlu1 %v1869_v33, %s2022_s26  ;;  %v1071_v33 = vld [vmem:[%s2214_s22] sm:$0x3] }
 0xad4   :  { %v751_v34 = vpop.permute.xlu0 %750 }
 0xad5   :  { %v753_v35 = vmul.f32 %v1863_v13, %v751_v34  ;;  %v776_v36 = vpop.permute.xlu1 %775 }
 0xad6   :  { %v778_v37 = vmul.f32 %v1865_v17, %v776_v36 }
 0xad7   :  { %780 = vrot.lane.b32.xlu0 %v753_v35, %s2028_s28 }
 0xad8   :  { %786 = vrot.lane.b32.xlu1 %v778_v37, %s2029_s29 }
 0xb49   :  { %v781_v38 = vpop.permute.xlu0 %780 }
 0xb4a   :  { %784 = vst.msk [vmem:[#allocation9 + $0x6] sm:$0x3] %vm244_vm1, %v781_v38  ;;  %v787_v39 = vpop.permute.xlu1 %786 }
 0xb4b   :  { %790 = vst.msk [vmem:[#allocation9 + $0x8] sm:$0x3] %vm251_vm2, %v787_v39  ;;  %v791_v40 = vsel %vm253_vm3, %v781_v38, %v787_v39 }
 0xb4c   :  { %1624 = vmatmul.mubr.msk.f32.vlgmr.msra.gmra.mrb[4].mxu0 %vm72_vm4, %v791_v40 }
 0xb4d   :  { %1766 = vmatpush1.bf16.msra.mxu0 %v2085_v8  ;;  %1213 = vmatprep.mubr.f32.mxu0 %v2027_v7 }
 0xb4e   :  { %1768 = vmatprep.subr.bf16.mxu0 %v2087_v9 }
 0xb51   :  { %1770 = vmatpush1.bf16.msra.mxu0 %v2092_v14 }
 0xb52   :  { %1772 = vmatprep.subr.bf16.mxu0 %v2096_v15 }
 0xb55   :  { %1774 = vmatpush1.bf16.msra.mxu0 %v2100_v20 }
 0xb56   :  { %1776 = vmatprep.subr.bf16.mxu0 %v2104_v21 }
 0xb59   :  { %1778 = vmatpush1.bf16.msra.mxu0 %v2108_v24 }
 0xc1f   :  { %v861_v51 = vpop.f32.mrb[4].mxu0 }
 0xc20   :  { %v908_v52 = vadd.f32 %v886_v49, %v861_v51  ;;  %v863_v53 = vpop.f32.mrb[5].mxu0 }
 0xc21   :  { %v933_v3 = vadd.f32 %v907_v50, %v863_v53 }
 0xc22   :  { %1870 = vtanh.f32 %v908_v52  ;;  %v1633_v56 = vmul.f32 -1.442695, %v908_v52 }
 0xc23   :  { %1872 = vtanh.f32 %v933_v3  ;;  %v1634_v57 = vmul.f32 -1.442695, %v933_v3 }
 0xc24   :  { %1874 = vpow2.f32 %v1633_v56 }
 0xc25   :  { %1876 = vpow2.f32 %v1634_v57 }
 0xc2c   :  { %v1871_v54 = vpop.eup %1870 }
 0xc2d   :  { %v1873_v55 = vpop.eup %1872  ;;  %918 = vrot.lane.b32.xlu0 %v1871_v54, %s2022_s26 }
 0xc2e   :  { %943 = vrot.lane.b32.xlu1 %v1873_v55, %s2022_s26  ;;  %v1875_v58 = vpop.eup %1874 }
 0xc2f   :  { %v1877_v59 = vpop.eup %1876  ;;  %v912_v60 = vadd.f32 1.0, %v1875_v58 }
 0xc30   :  { %v937_v61 = vadd.f32 1.0, %v1877_v59 }
 0xc31   :  { %1878 = vrcp.f32 %v912_v60 }
 0xc32   :  { %1880 = vrcp.f32 %v937_v61 }
 0xc3b   :  { %v1879_v62 = vpop.eup %1878 }
 0xc3c   :  { %v1881_v0 = vpop.eup %1880  ;;  %v916_v5 = vmul.f32 %v1879_v62, %v2282_v28 }
 0xc3d   :  { %v941_v10 = vmul.f32 %v1881_v0, %v2284_v31  ;;  %v1050_v31 = vld [vmem:[%s2220_s0] sm:$0x3]  ;;  %s1504_s0 = sshll.u32 %s2030_s23, 4  ;;  %s1505_s0 = int_to_ptr.vmem [resolvable:$true] %s1504_s0 }
 0xc3e   :  { %s1990_s24 = scalar_lea.vmem %s1505_s0, 256  ;;  %p1995_p8 = scmp.lt.s32.totalorder %s1505_s0, %s1505_s0 }
 0xc3f   :  { %p1991_p7 = scmp.ne.s32.totalorder %s1505_s0, %s1990_s24  ;;  %p1996_p9 = scmp.lt.s32.totalorder %s1990_s24, %s1990_s24 }
 0xc41   :  { %p1997_p10 = por %p1996_p9, %p1995_p8 }
 0xc43   :  { %p1998_p11 = pnand %p1997_p10, %p1991_p7 }
 0xc9f   :  { %v919_v63 = vpop.permute.xlu0 %918 }
 0xca0   :  { %v921_v1 = vmul.f32 %v1879_v62, %v919_v63  ;;  %v944_v2 = vpop.permute.xlu1 %943 }
 0xca1   :  { %v946_v4 = vmul.f32 %v1881_v0, %v944_v2  ;;  %v1244_v2 = vld [vmem:[%s2164_s11] sm:$0x3]  ;;  %s1658_s11 = sld [smem:[#allocation2 + $0x380]] }
 0xca2   :  { %923 = vrot.lane.b32.xlu0 %v921_v1, %s2022_s26  ;;  %v1227_v1 = vld [vmem:[%s2173_s13] sm:$0x3]  ;;  %s1663_s13 = sld [smem:[#allocation2 + $0x1]] }
 0xca3   :  { %948 = vrot.lane.b32.xlu1 %v946_v4, %s2022_s26  ;;  %v1248_v4 = vld [vmem:[%s2167_s12] sm:$0x3]  ;;  %s1660_s12 = sld [smem:[#allocation2 + $0x381]] }
 0xca7   :  { %s1659_s2 = sshll.u32 %s1658_s11, 1 }
 0xca8   :  { %s1664_s18 = sshll.u32 %s1663_s13, 1  ;;  %s1399_s19 = scalar_lea.vmem [#allocation6], %s1659_s2 }
 0xca9   :  { %s1661_s16 = sshll.u32 %s1660_s12, 1  ;;  %s1424_s22 = scalar_lea.vmem [#allocation6], %s1664_s18 }
 0xcaa   :  { %s1403_s20 = scalar_lea.vmem [#allocation6], %s1661_s16 }
 0xd14   :  { %v924_v6 = vpop.permute.xlu0 %923 }
 0xd15   :  { %v2320_v11 = vadd.f32 %v924_v6, %v916_v5  ;;  %v949_v12 = vpop.permute.xlu1 %948  ;;  %v1238_v6 = vrot.slane %v1227_v1, %v2127_v27 }
 0xd16   :  { %v2322_v13 = vadd.f32 %v949_v12, %v941_v10  ;;  %v1253_v10 = vrot.slane %v1244_v2, %v2129_v30 }
 0xd17   :  { %1882 = vtanh.f32 %v2320_v11 }
 0xd18   :  { %1884 = vtanh.f32 %v2322_v13 }
 0xd21   :  { %v1883_v16 = vpop.eup %1882 }
 0xd22   :  { %v1885_v17 = vpop.eup %1884  ;;  %929 = vrot.lane.b32.xlu0 %v1883_v16, %s2022_s26 }
 0xd23   :  { %954 = vrot.lane.b32.xlu1 %v1885_v17, %s2022_s26 }
 0xd94   :  { %v930_v18 = vpop.permute.xlu0 %929 }
 0xd95   :  { %v932_v19 = vmul.f32 %v1879_v62, %v930_v18  ;;  %v955_v22 = vpop.permute.xlu1 %954 }
 0xd96   :  { %v957_v23 = vmul.f32 %v1881_v0, %v955_v22  ;;  %v1223_v0 = vld [vmem:[%s2170_s1] sm:$0x3]  ;;  %s1418_s1 = sld [smem:[#allocation2]] }
 0xd97   :  { %959 = vrot.lane.b32.xlu0 %v932_v19, %s2028_s28  ;;  %v1232_v5 = vrot.slane %v1223_v0, %v2127_v27 }
 0xd98   :  { %964 = vrot.lane.b32.xlu1 %v957_v23, %s2029_s29 }
 0xd99   :  { %v1240_v12 = vsel %vm167_vm0, %v1232_v5, %v1238_v6 }
 0xd9c   :  { %s1662_s17 = sshll.u32 %s1418_s1, 1 }
 0xd9d   :  { %s1420_s21 = scalar_lea.vmem [#allocation6], %s1662_s17 }
 0xe09   :  { %v960_v25 = vpop.permute.xlu0 %959 }
 0xe0a   :  { %962 = vst.msk [vmem:[#allocation9 + $0x8] sm:$0x3] %vm244_vm1, %v960_v25  ;;  %v965_v26 = vpop.permute.xlu1 %964 }
 0xe0b   :  { %967 = vst.msk [vmem:[#allocation9 + $0x6] sm:$0x3] %vm251_vm2, %v965_v26  ;;  %v968_v28 = vsel %vm253_vm3, %v960_v25, %v965_v26 }
 0xe0c   :  { %1635 = vmatmul.mubr.msk.f32.vlgmr.msra.gmra.mrb[4].mxu1 %vm72_vm4, %v968_v28 }
 0xe0d   :  { %1782 = vmatpush1.bf16.msra.mxu1 %v2085_v8  ;;  %1390 = vmatprep.mubr.f32.mxu1 %v2027_v7  ;;  %v1055_v8 = vrot.slane %v1046_v29, %v2127_v27  ;;  %v1061_v7 = vrot.slane %v1050_v31, %v2127_v27 }
 0xe0e   :  { %1784 = vmatprep.subr.bf16.mxu1 %v2087_v9  ;;  %v1076_v9 = vrot.slane %v1067_v32, %v2129_v30 }
 0xe11   :  { %1786 = vmatpush1.bf16.msra.mxu1 %v2092_v14  ;;  %v1082_v14 = vrot.slane %v1071_v33, %v2129_v30 }
 0xe12   :  { %1788 = vmatprep.subr.bf16.mxu1 %v2096_v15  ;;  %v1063_v15 = vsel %vm167_vm0, %v1055_v8, %v1061_v7 }
 0xe15   :  { %1790 = vmatpush1.bf16.msra.mxu1 %v2100_v20  ;;  %v1084_v20 = vsel %vm167_vm0, %v1076_v9, %v1082_v14 }
 0xe16   :  { %1792 = vmatprep.subr.bf16.mxu1 %v2104_v21 }
 0xe19   :  { %1794 = vmatpush1.bf16.msra.mxu1 %v2108_v24 }
 0xedf   :  { %v1038_v34 = vpop.f32.mrb[4].mxu1 }
 0xee0   :  { %v1085_v21 = vadd.f32 %v1063_v15, %v1038_v34  ;;  %v1040_v35 = vpop.f32.mrb[5].mxu1 }
 0xee1   :  { %v1110_v24 = vadd.f32 %v1084_v20, %v1040_v35 }
 0xee2   :  { %1886 = vtanh.f32 %v1085_v21  ;;  %v1644_v38 = vmul.f32 -1.442695, %v1085_v21 }
 0xee3   :  { %1888 = vtanh.f32 %v1110_v24  ;;  %v1645_v39 = vmul.f32 -1.442695, %v1110_v24 }
 0xee4   :  { %1890 = vpow2.f32 %v1644_v38 }
 0xee5   :  { %1892 = vpow2.f32 %v1645_v39 }
 0xeec   :  { %v1887_v36 = vpop.eup %1886 }
 0xeed   :  { %v1889_v37 = vpop.eup %1888  ;;  %1095 = vrot.lane.b32.xlu0 %v1887_v36, %s2022_s26 }
 0xeee   :  { %1120 = vrot.lane.b32.xlu1 %v1889_v37, %s2022_s26  ;;  %v1891_v40 = vpop.eup %1890 }
 0xeef   :  { %v1893_v41 = vpop.eup %1892  ;;  %v1089_v42 = vadd.f32 1.0, %v1891_v40 }
 0xef0   :  { %v1114_v43 = vadd.f32 1.0, %v1893_v41 }
 0xef1   :  { %1894 = vrcp.f32 %v1089_v42 }
 0xef2   :  { %1896 = vrcp.f32 %v1114_v43 }
 0xefb   :  { %v1895_v44 = vpop.eup %1894 }
 0xefc   :  { %v1897_v46 = vpop.eup %1896  ;;  %v1093_v50 = vmul.f32 %v1895_v44, %v2320_v11  ;;  %v1259_v11 = vrot.slane %v1248_v4, %v2129_v30 }
 0xefd   :  { %v1118_v52 = vmul.f32 %v1897_v46, %v2322_v13 }
 0xefe   :  { %v1261_v13 = vsel %vm167_vm0, %v1253_v10, %v1259_v11 }
 0xf5f   :  { %v1096_v45 = vpop.permute.xlu0 %1095 }
 0xf60   :  { %v1098_v47 = vmul.f32 %v1895_v44, %v1096_v45  ;;  %v1121_v48 = vpop.permute.xlu1 %1120 }
 0xf61   :  { %v1123_v49 = vmul.f32 %v1897_v46, %v1121_v48  ;;  %v1421_v48 = vld [vmem:[%s1420_s21] sm:$0x3] }
 0xf62   :  { %1100 = vrot.lane.b32.xlu0 %v1098_v47, %s2022_s26  ;;  %v1404_v47 = vld [vmem:[%s1403_s20] sm:$0x3] }
 0xf63   :  { %1125 = vrot.lane.b32.xlu1 %v1123_v49, %s2022_s26  ;;  %v1425_v49 = vld [vmem:[%s1424_s22] sm:$0x3] }
 0xfd4   :  { %v1101_v51 = vpop.permute.xlu0 %1100 }
 0xfd5   :  { %v1103_v53 = vadd.f32 %v1101_v51, %v1093_v50  ;;  %v1126_v3 = vpop.permute.xlu1 %1125  ;;  %v1415_v51 = vrot.slane %v1404_v47, %v2127_v27 }
 0xfd6   :  { %v1128_v54 = vadd.f32 %v1126_v3, %v1118_v52  ;;  %v1430_v52 = vrot.slane %v1421_v48, %v2129_v30 }
 0xfd7   :  { %1898 = vtanh.f32 %v1103_v53 }
 0xfd8   :  { %1900 = vtanh.f32 %v1128_v54 }
 0xfe1   :  { %v1899_v55 = vpop.eup %1898 }
 0xfe2   :  { %v1901_v56 = vpop.eup %1900  ;;  %1106 = vrot.lane.b32.xlu0 %v1899_v55, %s2022_s26 }
 0xfe3   :  { %1131 = vrot.lane.b32.xlu1 %v1901_v56, %s2022_s26 }
0x1054   :  { %v1107_v57 = vpop.permute.xlu0 %1106 }
0x1055   :  { %v1109_v58 = vmul.f32 %v1895_v44, %v1107_v57  ;;  %v1132_v59 = vpop.permute.xlu1 %1131 }
0x1056   :  { %v1134_v60 = vmul.f32 %v1897_v46, %v1132_v59  ;;  %v1400_v46 = vld [vmem:[%s1399_s19] sm:$0x3] }
0x1057   :  { %1136 = vrot.lane.b32.xlu0 %v1109_v58, %s2028_s28  ;;  %v1409_v50 = vrot.slane %v1400_v46, %v2127_v27 }
0x1058   :  { %1141 = vrot.lane.b32.xlu1 %v1134_v60, %s2029_s29 }
0x1059   :  { %v1417_v3 = vsel %vm167_vm0, %v1409_v50, %v1415_v51 }
0x10c9   :  { %v1137_v61 = vpop.permute.xlu0 %1136 }
0x10ca   :  { %1139 = vst.msk [vmem:[#allocation9 + $0xa] sm:$0x3] %vm244_vm1, %v1137_v61  ;;  %v1142_v62 = vpop.permute.xlu1 %1141 }
0x10cb   :  { %1144 = vst.msk [vmem:[#allocation9 + $0x4] sm:$0x3] %vm251_vm2, %v1142_v62  ;;  %v1145_v63 = vsel %vm253_vm3, %v1137_v61, %v1142_v62 }
0x10cc   :  { %1646 = vmatmul.mubr.msk.f32.vlgmr.msra.gmra.mrb[6].mxu0 %vm72_vm4, %v1145_v63 }
0x119f   :  { %v1215_v16 = vpop.f32.mrb[6].mxu0 }
0x11a0   :  { %v1262_v17 = vadd.f32 %v1240_v12, %v1215_v16  ;;  %v1217_v18 = vpop.f32.mrb[7].mxu0 }
0x11a1   :  { %v1287_v19 = vadd.f32 %v1261_v13, %v1217_v18 }
0x11a2   :  { %1902 = vtanh.f32 %v1262_v17  ;;  %v1655_v25 = vmul.f32 -1.442695, %v1262_v17 }
0x11a3   :  { %1904 = vtanh.f32 %v1287_v19  ;;  %v1656_v26 = vmul.f32 -1.442695, %v1287_v19 }
0x11a4   :  { %1906 = vpow2.f32 %v1655_v25 }
0x11a5   :  { %1908 = vpow2.f32 %v1656_v26 }
0x11ac   :  { %v1903_v22 = vpop.eup %1902 }
0x11ad   :  { %v1905_v23 = vpop.eup %1904  ;;  %1272 = vrot.lane.b32.xlu0 %v1903_v22, %s2022_s26 }
0x11ae   :  { %1297 = vrot.lane.b32.xlu1 %v1905_v23, %s2022_s26  ;;  %v1907_v28 = vpop.eup %1906 }
0x11af   :  { %v1909_v29 = vpop.eup %1908  ;;  %v1266_v31 = vadd.f32 1.0, %v1907_v28 }
0x11b0   :  { %v1291_v32 = vadd.f32 1.0, %v1909_v29 }
0x11b1   :  { %1910 = vrcp.f32 %v1266_v31 }
0x11b2   :  { %1912 = vrcp.f32 %v1291_v32 }
0x11bb   :  { %v1911_v33 = vpop.eup %1910 }
0x11bc   :  { %v1913_v7 = vpop.eup %1912  ;;  %v1270_v20 = vmul.f32 %v1911_v33, %v1103_v53  ;;  %v1436_v53 = vrot.slane %v1425_v49, %v2129_v30 }
0x11bd   :  { %v1295_v21 = vmul.f32 %v1913_v7, %v1128_v54 }
0x11be   :  { %v1438_v54 = vsel %vm167_vm0, %v1430_v52, %v1436_v53 }
0x121f   :  { %v1273_v8 = vpop.permute.xlu0 %1272 }
0x1220   :  { %v1275_v9 = vmul.f32 %v1911_v33, %v1273_v8  ;;  %v1298_v14 = vpop.permute.xlu1 %1297 }
0x1221   :  { %v1300_v15 = vmul.f32 %v1913_v7, %v1298_v14 }
0x1222   :  { %1277 = vrot.lane.b32.xlu0 %v1275_v9, %s2022_s26 }
0x1223   :  { %1302 = vrot.lane.b32.xlu1 %v1300_v15, %s2022_s26 }
0x1294   :  { %v1278_v34 = vpop.permute.xlu0 %1277 }
0x1295   :  { %v2380_v35 = vadd.f32 %v1278_v34, %v1270_v20  ;;  %v1303_v24 = vpop.permute.xlu1 %1302 }
0x1296   :  { %v2382_v36 = vadd.f32 %v1303_v24, %v1295_v21 }
0x1297   :  { %1914 = vtanh.f32 %v2380_v35 }
0x1298   :  { %1916 = vtanh.f32 %v2382_v36 }
0x12a1   :  { %v1915_v37 = vpop.eup %1914 }
0x12a2   :  { %v1917_v38 = vpop.eup %1916  ;;  %1283 = vrot.lane.b32.xlu0 %v1915_v37, %s2022_s26 }
0x12a3   :  { %1308 = vrot.lane.b32.xlu1 %v1917_v38, %s2022_s26 }
0x1314   :  { %v1284_v39 = vpop.permute.xlu0 %1283 }
0x1315   :  { %v1286_v40 = vmul.f32 %v1911_v33, %v1284_v39  ;;  %v1309_v41 = vpop.permute.xlu1 %1308 }
0x1316   :  { %v1311_v42 = vmul.f32 %v1913_v7, %v1309_v41 }
0x1317   :  { %1313 = vrot.lane.b32.xlu0 %v1286_v40, %s2028_s28 }
0x1318   :  { %1318 = vrot.lane.b32.xlu1 %v1311_v42, %s2029_s29 }
0x1389   :  { %v1314_v43 = vpop.permute.xlu0 %1313 }
0x138a   :  { %1316 = vst.msk [vmem:[#allocation9 + $0xc] sm:$0x3] %vm244_vm1, %v1314_v43  ;;  %v1319_v44 = vpop.permute.xlu1 %1318 }
0x138b   :  { %1321 = vst.msk [vmem:[#allocation9 + $0x2] sm:$0x3] %vm251_vm2, %v1319_v44  ;;  %v1322_v45 = vsel %vm253_vm3, %v1314_v43, %v1319_v44 }
0x138c   :  { %1657 = vmatmul.mubr.msk.f32.vlgmr.msra.gmra.mrb[6].mxu1 %vm72_vm4, %v1322_v45 }
0x145f   :  { %v1392_v55 = vpop.f32.mrb[6].mxu1 }
0x1460   :  { %v1439_v56 = vadd.f32 %v1417_v3, %v1392_v55  ;;  %v1394_v57 = vpop.f32.mrb[7].mxu1 }
0x1461   :  { %v1464_v58 = vadd.f32 %v1438_v54, %v1394_v57 }
0x1462   :  { %1918 = vtanh.f32 %v1439_v56  ;;  %v1665_v27 = vmul.f32 -1.442695, %v1439_v56 }
0x1463   :  { %1920 = vtanh.f32 %v1464_v58  ;;  %v1666_v61 = vmul.f32 -1.442695, %v1464_v58 }
0x1464   :  { %1922 = vpow2.f32 %v1665_v27 }
0x1465   :  { %1924 = vpow2.f32 %v1666_v61 }
0x146c   :  { %v1919_v59 = vpop.eup %1918 }
0x146d   :  { %v1921_v60 = vpop.eup %1920  ;;  %1449 = vrot.lane.b32.xlu0 %v1919_v59, %s2022_s26 }
0x146e   :  { %1474 = vrot.lane.b32.xlu1 %v1921_v60, %s2022_s26  ;;  %v1923_v30 = vpop.eup %1922 }
0x146f   :  { %v1925_v62 = vpop.eup %1924  ;;  %v1443_v63 = vadd.f32 1.0, %v1923_v30 }
0x1470   :  { %v1468_v0 = vadd.f32 1.0, %v1925_v62 }
0x1471   :  { %1926 = vrcp.f32 %v1443_v63 }
0x1472   :  { %1928 = vrcp.f32 %v1468_v0 }
0x147b   :  { %v1927_v1 = vpop.eup %1926 }
0x147c   :  { %v1929_v4 = vpop.eup %1928  ;;  %v1447_v11 = vmul.f32 %v1927_v1, %v2380_v35 }
0x147d   :  { %v1472_v13 = vmul.f32 %v1929_v4, %v2382_v36 }
0x14df   :  { %v1450_v2 = vpop.permute.xlu0 %1449 }
0x14e0   :  { %v1452_v5 = vmul.f32 %v1927_v1, %v1450_v2  ;;  %v1475_v6 = vpop.permute.xlu1 %1474 }
0x14e1   :  { %v1477_v10 = vmul.f32 %v1929_v4, %v1475_v6 }
0x14e2   :  { %1454 = vrot.lane.b32.xlu0 %v1452_v5, %s2022_s26 }
0x14e3   :  { %1479 = vrot.lane.b32.xlu1 %v1477_v10, %s2022_s26 }
0x1554   :  { %v1455_v12 = vpop.permute.xlu0 %1454 }
0x1555   :  { %v1457_v16 = vadd.f32 %v1455_v12, %v1447_v11  ;;  %v1480_v17 = vpop.permute.xlu1 %1479 }
0x1556   :  { %v1482_v18 = vadd.f32 %v1480_v17, %v1472_v13 }
0x1557   :  { %1930 = vtanh.f32 %v1457_v16 }
0x1558   :  { %1932 = vtanh.f32 %v1482_v18 }
0x1561   :  { %v1931_v19 = vpop.eup %1930 }
0x1562   :  { %v1933_v22 = vpop.eup %1932  ;;  %1460 = vrot.lane.b32.xlu0 %v1931_v19, %s2022_s26 }
0x1563   :  { %1485 = vrot.lane.b32.xlu1 %v1933_v22, %s2022_s26 }
0x15d4   :  { %v1461_v23 = vpop.permute.xlu0 %1460 }
0x15d5   :  { %v1463_v25 = vmul.f32 %v1927_v1, %v1461_v23  ;;  %v1486_v26 = vpop.permute.xlu1 %1485 }
0x15d6   :  { %v1488_v28 = vmul.f32 %v1929_v4, %v1486_v26 }
0x15d7   :  { %1490 = vrot.lane.b32.xlu0 %v1463_v25, %s2028_s28 }
0x15d8   :  { %1495 = vrot.lane.b32.xlu1 %v1488_v28, %s2029_s29 }
0x1649   :  { %v1491_v29 = vpop.permute.xlu0 %1490 }
0x164a   :  { %1493 = vst.msk [vmem:[#allocation9 + $0xe] sm:$0x3] %vm244_vm1, %v1491_v29  ;;  %v1496_v31 = vpop.permute.xlu1 %1495 }
0x164b   :  { %1498 = vst.msk [vmem:[#allocation9] sm:$0x3] %vm251_vm2, %v1496_v31 }
0x164c   :  { %2001 = shalt.err (!%p1998_p11)
}
0x164d   :  { %s2002_s29 = scalar_lea.hbm %s2430_s3, 256 }
0x164e   :  { %p2003_p12 = scmp.ne.s32.totalorder %s2430_s3, %s2002_s29  ;;  %p2006_p13 = scmp.lt.u32.totalorder %s2002_s29, %s2430_s3 }
0x1650   :  { %p2008_p0 = pnand %p2006_p13, %p2003_p12 }
0x1652   :  { %2011 = shalt.err (!%p2008_p0)
}
0x1653   :  { %1510 = dma.vmem_to_hbm [thread:$0]  %s1505_s0, 256, %s2430_s3, [#allocation4], %s2022_s26, %s2022_s26, %s2023_s27  }
0x1654   :  { %2018 = dma.done.wait [#allocation4], 256  }
0x1655   :  { %2019 = vsyncadd [#allocation4], 4294967040 }
0x1656   :  { %1514 = vsyncpa [#allocation3], 1 }
0x1657   :  { %1515 = vsyncpa [#allocation8], 1 }
0x1658   :  { %1516 = vsyncpa [#allocation4], 1 }
0x1659   :  { %1517 = vsyncpa [#allocation5], 1 }

</bundles_post_ra>
